<compile_context>
chip_gen: v5e
topology: v5e:2x2
jax: 0.10.0
libtpu: 0.0.40
codegen_flags: <defaults>
</compile_context>

<pallas_src>
import functools
import math

import jax
import jax.numpy as jnp
from jax.experimental import pallas as pl
from jax.experimental.pallas import tpu as pltpu


def _lstm_chunk_kernel(x_ref, wih_ref, whh_ref, b_ref,
                       out_ref, h_out_ref, c_out_ref,
                       h_sc, c_sc, xp_sc,
                       *, batch_p, hidden_p, chunk_t, seq_len, unroll):
    """One grid step == `chunk_t` LSTM timesteps (sequential grid axis).

    Refs:
      x_ref   : (chunk_t*Bp, F)        time-major, batch-padded input chunk
      wih_ref : (F, 4*Hp)              resident weights (gate order i,f,o,g; lane-padded)
      whh_ref : (Hp, 4*Hp) f32         resident recurrent weights
      b_ref   : (1, 4*Hp) f32          fused b_ih + b_hh (packed like the weights)
      out_ref : (chunk_t*Bp, Hp)       per-chunk output slab (lane-dense)
      h_out_ref, c_out_ref : (Bp, Hp)  final states (written on the last chunk)
      h_sc, c_sc : (Bp, Hp) f32        recurrent state carried across chunks
      xp_sc      : (chunk_t*Bp, 4*Hp)  hoisted input projection for this chunk
    """
    Bp, Hp, Tt, T = batch_p, hidden_p, chunk_t, seq_len
    c_idx = pl.program_id(0)
    n_chunks = pl.num_programs(0)
    needs_mask = (T % Tt) != 0  # static: only trace the masked variant if padded

    # zero-initialize the recurrent state (matches Variable(torch.zeros(...)))
    @pl.when(c_idx == 0)
    def _init():
        h_sc[...] = jnp.zeros_like(h_sc)
        c_sc[...] = jnp.zeros_like(c_sc)

    # Hoisted input projection for the whole chunk: one big MXU matmul with no
    # sequential dependency, bias fused in, f32 accumulation.
    xp_sc[...] = (
        jnp.dot(x_ref[...], wih_ref[...], preferred_element_type=jnp.float32)
        + b_ref[...]
    )

    whh = whh_ref[...]  # f32 resident weights, hoisted out of the loop

    def make_step(masked):
        def step(t, carry):
            h_prev, c_prev = carry
            off = pl.multiple_of(t * Bp, Bp)           # sublane-tile aligned
            g_x = xp_sc[pl.ds(off, Bp), :]             # (Bp, 4*Hp), full tiles
            gates = g_x + jnp.dot(h_prev, whh, preferred_element_type=jnp.float32)
            # gate layout: (i | f | o | g), each zero-padded to Hp (128) lanes
            sig = jax.nn.sigmoid(gates[:, :3 * Hp])    # one contiguous EUP slab
            g = jnp.tanh(gates[:, 3 * Hp:])            # one EUP slab
            i = sig[:, 0 * Hp:1 * Hp]
            f = sig[:, 1 * Hp:2 * Hp]
            o = sig[:, 2 * Hp:3 * Hp]
            c_new = f * c_prev + i * g
            h_new = o * jnp.tanh(c_new)
            if masked:
                valid = (c_idx * Tt + t) < T
                h_new = jnp.where(valid, h_new, h_prev)
                c_new = jnp.where(valid, c_new, c_prev)
            out_ref[pl.ds(off, Bp), :] = h_new.astype(out_ref.dtype)
            return (h_new, c_new)
        return step

    def run_chunk(masked):
        return jax.lax.fori_loop(0, Tt, make_step(masked),
                                 (h_sc[...], c_sc[...]), unroll=unroll)

    if needs_mask:
        is_last = c_idx == n_chunks - 1

        @pl.when(c_idx != n_chunks - 1)
        def _full_chunk():  # fast path: no selects on the serial chain
            h_last, c_last = run_chunk(masked=False)
            h_sc[...] = h_last
            c_sc[...] = c_last

        @pl.when(is_last)
        def _tail_chunk():  # only the final (padded) chunk pays masking cost
            h_last, c_last = run_chunk(masked=True)
            h_sc[...] = h_last
            c_sc[...] = c_last
            h_out_ref[...] = h_last.astype(h_out_ref.dtype)
            c_out_ref[...] = c_last.astype(c_out_ref.dtype)
    else:
        h_last, c_last = run_chunk(masked=False)
        h_sc[...] = h_last
        c_sc[...] = c_last

        @pl.when(c_idx == n_chunks - 1)
        def _finalize():
            h_out_ref[...] = h_last.astype(h_out_ref.dtype)
            c_out_ref[...] = c_last.astype(c_out_ref.dtype)


def _pack_gate_blocks(w, hidden, hidden_p):
    """PyTorch-layout (4H, D) weight -> (D, 4*Hp), gate order (i, f, o, g),
    each gate zero-padded from H to Hp output lanes (Hp multiple of 128)."""
    H, Hp = hidden, hidden_p
    D = w.shape[1]
    blocks = []
    for r in (0, 1, 3, 2):  # PyTorch rows are (i, f, g, o) -> emit (i, f, o, g)
        blk = jnp.zeros((Hp, D), w.dtype).at[:H, :].set(w[r * H:(r + 1) * H, :])
        blocks.append(blk)
    return jnp.concatenate(blocks, axis=0).T  # (D, 4*Hp)


def _pack_gate_bias(b_ih, b_hh, hidden, hidden_p):
    H, Hp = hidden, hidden_p
    b = (b_ih + b_hh).astype(jnp.float32)
    blocks = []
    for r in (0, 1, 3, 2):
        blocks.append(jnp.zeros((Hp,), jnp.float32).at[:H].set(b[r * H:(r + 1) * H]))
    return jnp.concatenate(blocks).reshape(1, 4 * Hp)


def lstm_encoder_forward(x, w_ih, w_hh, b_ih, b_hh, *,
                         chunk_t=8, compute_dtype=jnp.float32):
    """x: (B, T, F) batch_first, like the PyTorch module.

    Returns (outputs, hidden, cell) with shapes (B, T, H), (1, B, H), (1, B, H).
    `compute_dtype=jnp.bfloat16` uses bf16 only for the hoisted x-projection
    operands (x, W_ih) with f32 accumulation; W_hh, h/c state and all gate math
    stay f32 (keep the f32 default on v5e, which has no bf16 VPU/EUP).
    On v6e/v5e (128 MiB VMEM) a larger chunk_t (e.g. 16-32) further amortizes
    grid overhead; re-derive for v7x's 64 MiB VMEM at large F/H.
    """
    B, T, F = x.shape
    H = w_ih.shape[0] // 4

    SUB, LANE = 8, 128
    Bp = ((B + SUB - 1) // SUB) * SUB          # batch padded to a full sublane tile
    Hp = ((H + LANE - 1) // LANE) * LANE       # per-gate width padded to full lanes

    chunk_t = max(1, int(chunk_t))
    n_chunks = (T + chunk_t - 1) // chunk_t
    t_pad = n_chunks * chunk_t

    # time-major, batch-padded, flattened to 2-D: every per-chunk / per-step block
    # is a whole (8,128)-aligned slab.
    x_tm = jnp.transpose(x, (1, 0, 2))                                 # (T, B, F)
    x_tm = jnp.pad(x_tm, ((0, t_pad - T), (0, Bp - B), (0, 0)))        # (t_pad, Bp, F)
    x2 = x_tm.reshape(t_pad * Bp, F).astype(compute_dtype)             # (t_pad*Bp, F)

    # gate-permuted, lane-padded weights / bias (order i, f, o, g)
    wih_p = _pack_gate_blocks(w_ih.astype(jnp.float32), H, Hp).astype(compute_dtype)
    whh_p = jnp.zeros((Hp, 4 * Hp), jnp.float32).at[:H, :].set(
        _pack_gate_blocks(w_hh.astype(jnp.float32), H, Hp))            # f32, padded rows zero
    bias_p = _pack_gate_bias(b_ih, b_hh, H, Hp)                        # (1, 4*Hp) f32

    # cap unrolling so the per-step gate slab does not overrun the 64-vreg file
    gate_vregs = max(1, (Bp * 4 * Hp * 4) // (8 * 128 * 4))
    unroll = max(1, min(chunk_t, 32 // gate_vregs))

    # explicit VMEM budget (v5e default scoped VMEM is only 16 MiB)
    def _pad_bytes(rows, cols, itemsize):
        return ((rows + 7) // 8 * 8) * ((cols + 127) // 128 * 128) * itemsize

    cd = jnp.dtype(compute_dtype).itemsize
    vmem_need = (
        2 * _pad_bytes(chunk_t * Bp, F, cd)         # input chunks (double-buffered)
        + _pad_bytes(F, 4 * Hp, cd)                 # resident W_ih
        + _pad_bytes(Hp, 4 * Hp, 4)                 # resident W_hh
        + _pad_bytes(1, 4 * Hp, 4)                  # fused bias
        + 2 * _pad_bytes(chunk_t * Bp, Hp, 4)       # output chunks
        + 4 * _pad_bytes(Bp, Hp, 4)                 # final h/c outputs
        + 2 * _pad_bytes(Bp, Hp, 4)                 # h/c scratch
        + _pad_bytes(chunk_t * Bp, 4 * Hp, 4)       # hoisted x-projection scratch
    )
    vmem_limit = int(min(100 * 2 ** 20, max(16 * 2 ** 20, 2 * vmem_need)))

    kernel = functools.partial(
        _lstm_chunk_kernel, batch_p=Bp, hidden_p=Hp,
        chunk_t=chunk_t, seq_len=T, unroll=unroll)

    out2, h_last, c_last = pl.pallas_call(
        kernel,
        out_shape=(
            jax.ShapeDtypeStruct((t_pad * Bp, Hp), jnp.float32),
            jax.ShapeDtypeStruct((Bp, Hp), jnp.float32),
            jax.ShapeDtypeStruct((Bp, Hp), jnp.float32),
        ),
        grid_spec=pltpu.PrefetchScalarGridSpec(
            num_scalar_prefetch=0,
            grid=(n_chunks,),
            in_specs=[
                # one time-chunk of inputs per grid step (double-buffered)
                pl.BlockSpec((chunk_t * Bp, F), lambda c: (c, 0)),
                # weights / bias: single resident VMEM copy (no double buffer)
                pl.BlockSpec(memory_space=pltpu.MemorySpace.VMEM),
                pl.BlockSpec(memory_space=pltpu.MemorySpace.VMEM),
                pl.BlockSpec(memory_space=pltpu.MemorySpace.VMEM),
            ],
            out_specs=[
                pl.BlockSpec((chunk_t * Bp, Hp), lambda c: (c, 0)),    # outputs
                pl.BlockSpec((Bp, Hp), lambda c: (0, 0)),              # final h
                pl.BlockSpec((Bp, Hp), lambda c: (0, 0)),              # final c
            ],
            scratch_shapes=[
                pltpu.VMEM((Bp, Hp), jnp.float32),                     # h state
                pltpu.VMEM((Bp, Hp), jnp.float32),                     # c state
                pltpu.VMEM((chunk_t * Bp, 4 * Hp), jnp.float32),       # x projection
            ],
        ),
        compiler_params=pltpu.CompilerParams(
            # time-chunk axis carries the recurrence -> strictly sequential
            dimension_semantics=("arbitrary",),
            vmem_limit_bytes=vmem_limit,
        ),
    )(x2, wih_p, whh_p, bias_p)

    outputs = out2.reshape(t_pad, Bp, Hp)[:T, :B, :H]                  # (T, B, H)
    outputs = jnp.transpose(outputs, (1, 0, 2))                        # (B, T, H)
    hidden = h_last[:B, :H][None]                                      # (1, B, H)
    cell = c_last[:B, :H][None]                                        # (1, B, H)
    return outputs, hidden, cell


def _reference_lstm(x, w_ih, w_hh, b_ih, b_hh):
    """Pure-JAX reference implementing PyTorch nn.LSTM semantics (i, f, g, o)."""
    B, T, F = x.shape
    H = w_hh.shape[1]
    bias = b_ih + b_hh

    def step(carry, x_t):
        h, c = carry
        gates = x_t @ w_ih.T + h @ w_hh.T + bias
        i = jax.nn.sigmoid(gates[:, 0 * H:1 * H])
        f = jax.nn.sigmoid(gates[:, 1 * H:2 * H])
        g = jnp.tanh(gates[:, 2 * H:3 * H])
        o = jax.nn.sigmoid(gates[:, 3 * H:4 * H])
        c_new = f * c + i * g
        h_new = o * jnp.tanh(c_new)
        return (h_new, c_new), h_new

    h0 = jnp.zeros((B, H), jnp.float32)
    c0 = jnp.zeros((B, H), jnp.float32)
    (h_T, c_T), ys = jax.lax.scan(step, (h0, c0), jnp.transpose(x, (1, 0, 2)))
    return jnp.transpose(ys, (1, 0, 2)), h_T[None], c_T[None]


if __name__ == "__main__":
    # Small shapes consistent with the module: Encoder(n_features=4, hidden_dim=32)
    B, T, F, H = 2, 8, 4, 32

    key = jax.random.PRNGKey(0)
    k_x, k_wih, k_whh, k_bih, k_bhh = jax.random.split(key, 5)

    # Deterministic parameter init (PyTorch uses U(-1/sqrt(H), 1/sqrt(H)))
    bound = 1.0 / math.sqrt(H)
    w_ih = jax.random.uniform(k_wih, (4 * H, F), jnp.float32, -bound, bound)
    w_hh = jax.random.uniform(k_whh, (4 * H, H), jnp.float32, -bound, bound)
    b_ih = jax.random.uniform(k_bih, (4 * H,), jnp.float32, -bound, bound)
    b_hh = jax.random.uniform(k_bhh, (4 * H,), jnp.float32, -bound, bound)

    x = jax.random.normal(k_x, (B, T, F), jnp.float32)

    # NOTE: nn.LSTM dropout=0.35 with num_layers=1 is a no-op in PyTorch.
    ref_out, ref_h, ref_c = _reference_lstm(x, w_ih, w_hh, b_ih, b_hh)

    # f32, multi-chunk, exact tiling (cross-chunk h/c carry, unmasked fast path)
    outputs, hidden, cell = lstm_encoder_forward(x, w_ih, w_hh, b_ih, b_hh,
                                                 chunk_t=4)
    jax.block_until_ready((outputs, hidden, cell))
    assert outputs.shape == (B, T, H)
    assert hidden.shape == (1, B, H) and cell.shape == (1, B, H)
    assert jnp.allclose(outputs, ref_out, atol=1e-5, rtol=1e-5)
    assert jnp.allclose(hidden, ref_h, atol=1e-5, rtol=1e-5)
    assert jnp.allclose(cell, ref_c, atol=1e-5, rtol=1e-5)

    # f32, chunk larger than T (single chunk, masked tail path)
    out_p, h_p, c_p = lstm_encoder_forward(x, w_ih, w_hh, b_ih, b_hh, chunk_t=12)
    jax.block_until_ready((out_p, h_p, c_p))
    assert jnp.allclose(out_p, ref_out, atol=1e-5, rtol=1e-5)
    assert jnp.allclose(h_p, ref_h, atol=1e-5, rtol=1e-5)
    assert jnp.allclose(c_p, ref_c, atol=1e-5, rtol=1e-5)

    # f32, ragged multi-chunk (fast path for full chunks, masked last chunk only)
    out_r, h_r, c_r = lstm_encoder_forward(x, w_ih, w_hh, b_ih, b_hh, chunk_t=3)
    jax.block_until_ready((out_r, h_r, c_r))
    assert jnp.allclose(out_r, ref_out, atol=1e-5, rtol=1e-5)
    assert jnp.allclose(h_r, ref_h, atol=1e-5, rtol=1e-5)
    assert jnp.allclose(c_r, ref_c, atol=1e-5, rtol=1e-5)

    # bf16 x-projection operands (W_hh / h / gate math stay f32), f32 accumulation
    out_bf, h_bf, c_bf = lstm_encoder_forward(x, w_ih, w_hh, b_ih, b_hh,
                                              chunk_t=8,
                                              compute_dtype=jnp.bfloat16)
    jax.block_until_ready((out_bf, h_bf, c_bf))
    assert jnp.allclose(out_bf, ref_out, atol=5e-2, rtol=5e-2)
    assert jnp.allclose(h_bf, ref_h, atol=5e-2, rtol=5e-2)
    assert jnp.allclose(c_bf, ref_c, atol=5e-2, rtol=5e-2)

    print("KERNEL_OK")
</pallas_src>

<mosaic_0001>
module attributes {stable_mosaic.version = 11 : i64} {
  func.func @_lstm_chunk_kernel(%arg0: i32, %arg1: memref<32x4xf32, #tpu.memory_space<vmem>>, %arg2: memref<4x512xf32, #tpu.memory_space<vmem>>, %arg3: memref<128x512xf32, #tpu.memory_space<vmem>>, %arg4: memref<1x512xf32, #tpu.memory_space<vmem>>, %arg5: memref<32x128xf32, #tpu.memory_space<vmem>>, %arg6: memref<8x128xf32, #tpu.memory_space<vmem>>, %arg7: memref<8x128xf32, #tpu.memory_space<vmem>>, %arg8: memref<8x128xf32, #tpu.memory_space<vmem>>, %arg9: memref<8x128xf32, #tpu.memory_space<vmem>>, %arg10: memref<32x512xf32, #tpu.memory_space<vmem>>) attributes {dimension_semantics = [#tpu.dimension_semantics<arbitrary>], iteration_bounds = array<i64: 2>, scalar_prefetch = 0 : i64, scratch_operands = 3 : i64, tpu.core_type = #tpu.core_type<tc>, window_params = [{transform_indices = @transform_0, window_bounds = array<i64: 32, 4>}, {pipeline_mode = #tpu.pipeline_mode<synchronous>, transform_indices = @transform_1, window_bounds = array<i64: 4, 512>}, {pipeline_mode = #tpu.pipeline_mode<synchronous>, transform_indices = @transform_2, window_bounds = array<i64: 128, 512>}, {pipeline_mode = #tpu.pipeline_mode<synchronous>, transform_indices = @transform_3, window_bounds = array<i64: 1, 512>}, {transform_indices = @transform_4, window_bounds = array<i64: 32, 128>}, {pipeline_mode = #tpu.pipeline_mode<synchronous>, transform_indices = @transform_5, window_bounds = array<i64: 8, 128>}, {pipeline_mode = #tpu.pipeline_mode<synchronous>, transform_indices = @transform_6, window_bounds = array<i64: 8, 128>}]} {
    %c0_i32 = arith.constant 0 : i32
    %0 = arith.cmpi eq, %arg0, %c0_i32 : i32
    %1 = arith.extui %0 : i1 to i32
    %c0_i32_0 = arith.constant 0 : i32
    %2 = arith.cmpi ne, %1, %c0_i32_0 : i32
    scf.if %2 {
      %cst_40 = arith.constant 0.000000e+00 : f32
      %114 = vector.broadcast %cst_40 : f32 to vector<8x128xf32>
      %c0_41 = arith.constant 0 : index
      %c0_42 = arith.constant 0 : index
      %115 = vector.load %arg8[%c0_41, %c0_42] : memref<8x128xf32, #tpu.memory_space<vmem>>, vector<8x128xf32>
      tpu.vector_store %arg8[%c0_41, %c0_42], %114 {strides = array<i32>} : memref<8x128xf32, #tpu.memory_space<vmem>>, vector<8x128xf32>,
      %cst_43 = arith.constant 0.000000e+00 : f32
      %116 = vector.broadcast %cst_43 : f32 to vector<8x128xf32>
      %c0_44 = arith.constant 0 : index
      %c0_45 = arith.constant 0 : index
      %117 = vector.load %arg9[%c0_44, %c0_45] : memref<8x128xf32, #tpu.memory_space<vmem>>, vector<8x128xf32>
      tpu.vector_store %arg9[%c0_44, %c0_45], %116 {strides = array<i32>} : memref<8x128xf32, #tpu.memory_space<vmem>>, vector<8x128xf32>,
    } else {
    }
    %c0 = arith.constant 0 : index
    %c0_1 = arith.constant 0 : index
    %3 = vector.load %arg1[%c0, %c0_1] : memref<32x4xf32, #tpu.memory_space<vmem>>, vector<32x4xf32>
    %c0_2 = arith.constant 0 : index
    %c0_3 = arith.constant 0 : index
    %4 = vector.load %arg2[%c0_2, %c0_3] : memref<4x512xf32, #tpu.memory_space<vmem>>, vector<4x512xf32>
    %cst = arith.constant dense<0.000000e+00> : vector<32x512xf32>
    %5 = tpu.matmul %3, %4, %cst {dimension_numbers = #tpu.dot_dimension_numbers<[1], [0], [0], [1], [0, 0, 1, 1], [], []>} : vector<32x4xf32>, vector<4x512xf32>, vector<32x512xf32> -> vector<32x512xf32>
    %c0_4 = arith.constant 0 : index
    %c0_5 = arith.constant 0 : index
    %6 = vector.load %arg4[%c0_4, %c0_5] : memref<1x512xf32, #tpu.memory_space<vmem>>, vector<1x512xf32>
    %7 = vector.broadcast %6 : vector<1x512xf32> to vector<32x512xf32>
    %8 = arith.addf %5, %7 : vector<32x512xf32>
    %c0_6 = arith.constant 0 : index
    %c0_7 = arith.constant 0 : index
    %9 = vector.load %arg10[%c0_6, %c0_7] : memref<32x512xf32, #tpu.memory_space<vmem>>, vector<32x512xf32>
    tpu.vector_store %arg10[%c0_6, %c0_7], %8 {strides = array<i32>} : memref<32x512xf32, #tpu.memory_space<vmem>>, vector<32x512xf32>,
    %c0_8 = arith.constant 0 : index
    %c0_9 = arith.constant 0 : index
    %10 = vector.load %arg3[%c0_8, %c0_9] : memref<128x512xf32, #tpu.memory_space<vmem>>, vector<128x512xf32>
    %c0_10 = arith.constant 0 : index
    %c0_11 = arith.constant 0 : index
    %11 = vector.load %arg8[%c0_10, %c0_11] : memref<8x128xf32, #tpu.memory_space<vmem>>, vector<8x128xf32>
    %c0_12 = arith.constant 0 : index
    %c0_13 = arith.constant 0 : index
    %12 = vector.load %arg9[%c0_12, %c0_13] : memref<8x128xf32, #tpu.memory_space<vmem>>, vector<8x128xf32>
    %c0_i32_14 = arith.constant 0 : i32
    %c8_i32 = arith.constant 8 : i32
    %13 = arith.muli %c0_i32_14, %c8_i32 : i32
    %14 = tpu.assume_multiple %13, 8 : i32
    %15 = arith.index_cast %14 : i32 to index
    %c0_15 = arith.constant 0 : index
    %16 = vector.load %arg10[%15, %c0_15] : memref<32x512xf32, #tpu.memory_space<vmem>>, vector<8x512xf32>
    %cst_16 = arith.constant dense<0.000000e+00> : vector<8x512xf32>
    %17 = tpu.matmul %11, %10, %cst_16 {dimension_numbers = #tpu.dot_dimension_numbers<[1], [0], [0], [1], [0, 0, 1, 1], [], []>} : vector<8x128xf32>, vector<128x512xf32>, vector<8x512xf32> -> vector<8x512xf32>
    %18 = arith.addf %16, %17 : vector<8x512xf32>
    %19 = vector.extract_strided_slice %18 {offsets = [0, 0], sizes = [8, 384], strides = [1, 1]} : vector<8x512xf32> to vector<8x384xf32>
    %20 = arith.negf %19 : vector<8x384xf32>
    %21 = math.exp %20 : vector<8x384xf32>
    %cst_17 = arith.constant 1.000000e+00 : f32
    %22 = vector.broadcast %cst_17 : f32 to vector<8x384xf32>
    %23 = arith.addf %22, %21 : vector<8x384xf32>
    %24 = arith.divf %22, %23 : vector<8x384xf32>
    %25 = vector.extract_strided_slice %18 {offsets = [0, 384], sizes = [8, 128], strides = [1, 1]} : vector<8x512xf32> to vector<8x128xf32>
    %26 = math.tanh %25 : vector<8x128xf32>
    %27 = vector.extract_strided_slice %24 {offsets = [0, 0], sizes = [8, 128], strides = [1, 1]} : vector<8x384xf32> to vector<8x128xf32>
    %28 = vector.extract_strided_slice %24 {offsets = [0, 128], sizes = [8, 128], strides = [1, 1]} : vector<8x384xf32> to vector<8x128xf32>
    %29 = vector.extract_strided_slice %24 {offsets = [0, 256], sizes = [8, 128], strides = [1, 1]} : vector<8x384xf32> to vector<8x128xf32>
    %30 = arith.mulf %28, %12 : vector<8x128xf32>
    %31 = arith.mulf %27, %26 : vector<8x128xf32>
    %32 = arith.addf %30, %31 : vector<8x128xf32>
    %33 = math.tanh %32 : vector<8x128xf32>
    %34 = arith.mulf %29, %33 : vector<8x128xf32>
    %35 = arith.index_cast %14 : i32 to index
    %c0_18 = arith.constant 0 : index
    %36 = vector.load %arg5[%35, %c0_18] : memref<32x128xf32, #tpu.memory_space<vmem>>, vector<8x128xf32>
    tpu.vector_store %arg5[%35, %c0_18], %34 {strides = array<i32>} : memref<32x128xf32, #tpu.memory_space<vmem>>, vector<8x128xf32>,
    %c1_i32 = arith.constant 1 : i32
    %c8_i32_19 = arith.constant 8 : i32
    %37 = arith.muli %c1_i32, %c8_i32_19 : i32
    %38 = tpu.assume_multiple %37, 8 : i32
    %39 = arith.index_cast %38 : i32 to index
    %c0_20 = arith.constant 0 : index
    %40 = vector.load %arg10[%39, %c0_20] : memref<32x512xf32, #tpu.memory_space<vmem>>, vector<8x512xf32>
    %cst_21 = arith.constant dense<0.000000e+00> : vector<8x512xf32>
    %41 = tpu.matmul %34, %10, %cst_21 {dimension_numbers = #tpu.dot_dimension_numbers<[1], [0], [0], [1], [0, 0, 1, 1], [], []>} : vector<8x128xf32>, vector<128x512xf32>, vector<8x512xf32> -> vector<8x512xf32>
    %42 = arith.addf %40, %41 : vector<8x512xf32>
    %43 = vector.extract_strided_slice %42 {offsets = [0, 0], sizes = [8, 384], strides = [1, 1]} : vector<8x512xf32> to vector<8x384xf32>
    %44 = arith.negf %43 : vector<8x384xf32>
    %45 = math.exp %44 : vector<8x384xf32>
    %cst_22 = arith.constant 1.000000e+00 : f32
    %46 = vector.broadcast %cst_22 : f32 to vector<8x384xf32>
    %47 = arith.addf %46, %45 : vector<8x384xf32>
    %48 = arith.divf %46, %47 : vector<8x384xf32>
    %49 = vector.extract_strided_slice %42 {offsets = [0, 384], sizes = [8, 128], strides = [1, 1]} : vector<8x512xf32> to vector<8x128xf32>
    %50 = math.tanh %49 : vector<8x128xf32>
    %51 = vector.extract_strided_slice %48 {offsets = [0, 0], sizes = [8, 128], strides = [1, 1]} : vector<8x384xf32> to vector<8x128xf32>
    %52 = vector.extract_strided_slice %48 {offsets = [0, 128], sizes = [8, 128], strides = [1, 1]} : vector<8x384xf32> to vector<8x128xf32>
    %53 = vector.extract_strided_slice %48 {offsets = [0, 256], sizes = [8, 128], strides = [1, 1]} : vector<8x384xf32> to vector<8x128xf32>
    %54 = arith.mulf %52, %32 : vector<8x128xf32>
    %55 = arith.mulf %51, %50 : vector<8x128xf32>
    %56 = arith.addf %54, %55 : vector<8x128xf32>
    %57 = math.tanh %56 : vector<8x128xf32>
    %58 = arith.mulf %53, %57 : vector<8x128xf32>
    %59 = arith.index_cast %38 : i32 to index
    %c0_23 = arith.constant 0 : index
    %60 = vector.load %arg5[%59, %c0_23] : memref<32x128xf32, #tpu.memory_space<vmem>>, vector<8x128xf32>
    tpu.vector_store %arg5[%59, %c0_23], %58 {strides = array<i32>} : memref<32x128xf32, #tpu.memory_space<vmem>>, vector<8x128xf32>,
    %c2_i32 = arith.constant 2 : i32
    %c8_i32_24 = arith.constant 8 : i32
    %61 = arith.muli %c2_i32, %c8_i32_24 : i32
    %62 = tpu.assume_multiple %61, 8 : i32
    %63 = arith.index_cast %62 : i32 to index
    %c0_25 = arith.constant 0 : index
    %64 = vector.load %arg10[%63, %c0_25] : memref<32x512xf32, #tpu.memory_space<vmem>>, vector<8x512xf32>
    %cst_26 = arith.constant dense<0.000000e+00> : vector<8x512xf32>
    %65 = tpu.matmul %58, %10, %cst_26 {dimension_numbers = #tpu.dot_dimension_numbers<[1], [0], [0], [1], [0, 0, 1, 1], [], []>} : vector<8x128xf32>, vector<128x512xf32>, vector<8x512xf32> -> vector<8x512xf32>
    %66 = arith.addf %64, %65 : vector<8x512xf32>
    %67 = vector.extract_strided_slice %66 {offsets = [0, 0], sizes = [8, 384], strides = [1, 1]} : vector<8x512xf32> to vector<8x384xf32>
    %68 = arith.negf %67 : vector<8x384xf32>
    %69 = math.exp %68 : vector<8x384xf32>
    %cst_27 = arith.constant 1.000000e+00 : f32
    %70 = vector.broadcast %cst_27 : f32 to vector<8x384xf32>
    %71 = arith.addf %70, %69 : vector<8x384xf32>
    %72 = arith.divf %70, %71 : vector<8x384xf32>
    %73 = vector.extract_strided_slice %66 {offsets = [0, 384], sizes = [8, 128], strides = [1, 1]} : vector<8x512xf32> to vector<8x128xf32>
    %74 = math.tanh %73 : vector<8x128xf32>
    %75 = vector.extract_strided_slice %72 {offsets = [0, 0], sizes = [8, 128], strides = [1, 1]} : vector<8x384xf32> to vector<8x128xf32>
    %76 = vector.extract_strided_slice %72 {offsets = [0, 128], sizes = [8, 128], strides = [1, 1]} : vector<8x384xf32> to vector<8x128xf32>
    %77 = vector.extract_strided_slice %72 {offsets = [0, 256], sizes = [8, 128], strides = [1, 1]} : vector<8x384xf32> to vector<8x128xf32>
    %78 = arith.mulf %76, %56 : vector<8x128xf32>
    %79 = arith.mulf %75, %74 : vector<8x128xf32>
    %80 = arith.addf %78, %79 : vector<8x128xf32>
    %81 = math.tanh %80 : vector<8x128xf32>
    %82 = arith.mulf %77, %81 : vector<8x128xf32>
    %83 = arith.index_cast %62 : i32 to index
    %c0_28 = arith.constant 0 : index
    %84 = vector.load %arg5[%83, %c0_28] : memref<32x128xf32, #tpu.memory_space<vmem>>, vector<8x128xf32>
    tpu.vector_store %arg5[%83, %c0_28], %82 {strides = array<i32>} : memref<32x128xf32, #tpu.memory_space<vmem>>, vector<8x128xf32>,
    %c3_i32 = arith.constant 3 : i32
    %c8_i32_29 = arith.constant 8 : i32
    %85 = arith.muli %c3_i32, %c8_i32_29 : i32
    %86 = tpu.assume_multiple %85, 8 : i32
    %87 = arith.index_cast %86 : i32 to index
    %c0_30 = arith.constant 0 : index
    %88 = vector.load %arg10[%87, %c0_30] : memref<32x512xf32, #tpu.memory_space<vmem>>, vector<8x512xf32>
    %cst_31 = arith.constant dense<0.000000e+00> : vector<8x512xf32>
    %89 = tpu.matmul %82, %10, %cst_31 {dimension_numbers = #tpu.dot_dimension_numbers<[1], [0], [0], [1], [0, 0, 1, 1], [], []>} : vector<8x128xf32>, vector<128x512xf32>, vector<8x512xf32> -> vector<8x512xf32>
    %90 = arith.addf %88, %89 : vector<8x512xf32>
    %91 = vector.extract_strided_slice %90 {offsets = [0, 0], sizes = [8, 384], strides = [1, 1]} : vector<8x512xf32> to vector<8x384xf32>
    %92 = arith.negf %91 : vector<8x384xf32>
    %93 = math.exp %92 : vector<8x384xf32>
    %cst_32 = arith.constant 1.000000e+00 : f32
    %94 = vector.broadcast %cst_32 : f32 to vector<8x384xf32>
    %95 = arith.addf %94, %93 : vector<8x384xf32>
    %96 = arith.divf %94, %95 : vector<8x384xf32>
    %97 = vector.extract_strided_slice %90 {offsets = [0, 384], sizes = [8, 128], strides = [1, 1]} : vector<8x512xf32> to vector<8x128xf32>
    %98 = math.tanh %97 : vector<8x128xf32>
    %99 = vector.extract_strided_slice %96 {offsets = [0, 0], sizes = [8, 128], strides = [1, 1]} : vector<8x384xf32> to vector<8x128xf32>
    %100 = vector.extract_strided_slice %96 {offsets = [0, 128], sizes = [8, 128], strides = [1, 1]} : vector<8x384xf32> to vector<8x128xf32>
    %101 = vector.extract_strided_slice %96 {offsets = [0, 256], sizes = [8, 128], strides = [1, 1]} : vector<8x384xf32> to vector<8x128xf32>
    %102 = arith.mulf %100, %80 : vector<8x128xf32>
    %103 = arith.mulf %99, %98 : vector<8x128xf32>
    %104 = arith.addf %102, %103 : vector<8x128xf32>
    %105 = math.tanh %104 : vector<8x128xf32>
    %106 = arith.mulf %101, %105 : vector<8x128xf32>
    %107 = arith.index_cast %86 : i32 to index
    %c0_33 = arith.constant 0 : index
    %108 = vector.load %arg5[%107, %c0_33] : memref<32x128xf32, #tpu.memory_space<vmem>>, vector<8x128xf32>
    tpu.vector_store %arg5[%107, %c0_33], %106 {strides = array<i32>} : memref<32x128xf32, #tpu.memory_space<vmem>>, vector<8x128xf32>,
    %c4_i32 = arith.constant 4 : i32
    %c0_34 = arith.constant 0 : index
    %c0_35 = arith.constant 0 : index
    %109 = vector.load %arg8[%c0_34, %c0_35] : memref<8x128xf32, #tpu.memory_space<vmem>>, vector<8x128xf32>
    tpu.vector_store %arg8[%c0_34, %c0_35], %106 {strides = array<i32>} : memref<8x128xf32, #tpu.memory_space<vmem>>, vector<8x128xf32>,
    %c0_36 = arith.constant 0 : index
    %c0_37 = arith.constant 0 : index
    %110 = vector.load %arg9[%c0_36, %c0_37] : memref<8x128xf32, #tpu.memory_space<vmem>>, vector<8x128xf32>
    tpu.vector_store %arg9[%c0_36, %c0_37], %104 {strides = array<i32>} : memref<8x128xf32, #tpu.memory_space<vmem>>, vector<8x128xf32>,
    %c1_i32_38 = arith.constant 1 : i32
    %111 = arith.cmpi eq, %arg0, %c1_i32_38 : i32
    %112 = arith.extui %111 : i1 to i32
    %c0_i32_39 = arith.constant 0 : i32
    %113 = arith.cmpi ne, %112, %c0_i32_39 : i32
    scf.if %113 {
      %c0_40 = arith.constant 0 : index
      %c0_41 = arith.constant 0 : index
      %114 = vector.load %arg6[%c0_40, %c0_41] : memref<8x128xf32, #tpu.memory_space<vmem>>, vector<8x128xf32>
      tpu.vector_store %arg6[%c0_40, %c0_41], %106 {strides = array<i32>} : memref<8x128xf32, #tpu.memory_space<vmem>>, vector<8x128xf32>,
      %c0_42 = arith.constant 0 : index
      %c0_43 = arith.constant 0 : index
      %115 = vector.load %arg7[%c0_42, %c0_43] : memref<8x128xf32, #tpu.memory_space<vmem>>, vector<8x128xf32>
      tpu.vector_store %arg7[%c0_42, %c0_43], %104 {strides = array<i32>} : memref<8x128xf32, #tpu.memory_space<vmem>>, vector<8x128xf32>,
    } else {
    }
    return
  }
  func.func @transform_0(%arg0: i32) -> (i32, i32) {
    %c0_i32 = arith.constant 0 : i32
    %c0_i32_0 = arith.constant 0 : i32
    return %arg0, %c0_i32 : i32, i32
  }
  func.func @transform_1(%arg0: i32) -> (i32, i32) {
    %c0_i32 = arith.constant 0 : i32
    %c0_i32_0 = arith.constant 0 : i32
    %c0_i32_1 = arith.constant 0 : i32
    return %c0_i32, %c0_i32_0 : i32, i32
  }
  func.func @transform_2(%arg0: i32) -> (i32, i32) {
    %c0_i32 = arith.constant 0 : i32
    %c0_i32_0 = arith.constant 0 : i32
    %c0_i32_1 = arith.constant 0 : i32
    return %c0_i32, %c0_i32_0 : i32, i32
  }
  func.func @transform_3(%arg0: i32) -> (i32, i32) {
    %c0_i32 = arith.constant 0 : i32
    %c0_i32_0 = arith.constant 0 : i32
    %c0_i32_1 = arith.constant 0 : i32
    return %c0_i32, %c0_i32_0 : i32, i32
  }
  func.func @transform_4(%arg0: i32) -> (i32, i32) {
    %c0_i32 = arith.constant 0 : i32
    %c0_i32_0 = arith.constant 0 : i32
    return %arg0, %c0_i32 : i32, i32
  }
  func.func @transform_5(%arg0: i32) -> (i32, i32) {
    %c0_i32 = arith.constant 0 : i32
    %c0_i32_0 = arith.constant 0 : i32
    %c0_i32_1 = arith.constant 0 : i32
    return %c0_i32, %c0_i32_0 : i32, i32
  }
  func.func @transform_6(%arg0: i32) -> (i32, i32) {
    %c0_i32 = arith.constant 0 : i32
    %c0_i32_0 = arith.constant 0 : i32
    %c0_i32_1 = arith.constant 0 : i32
    return %c0_i32, %c0_i32_0 : i32, i32
  }
}

</mosaic_0001>

<bundles_post_ra>
// kernel: tpu_custom_call.1
= control target key start
LH: loop header
LB: loop body
LE: loop exit
PB: predicated region body
PF: predicated region fallthrough
CT: control target
= control target key end

     0   :  { %12 = vsyncpa [#allocation6], 0  ;;  %s2266_s0 = inlined_call_operand.vmem [shape: f32[64,4], index: 0, kind: input, shape index: {}]   ;;  %s2267_s1 = inlined_call_operand.vmem [shape: f32[4,512], index: 1, kind: input, shape index: {}]   ;;  %s2268_s2 = inlined_call_operand.hbm [shape: f32[128,512], index: 2, kind: input, shape index: {}]   ;;  %s2269_s3 = inlined_call_operand.vmem [shape: f32[1,512], index: 3, kind: input, shape index: {}]   ;;  %s2270_s4 = inlined_call_operand.hbm [shape: f32[64,128], index: 4, kind: output, shape index: {0}]   ;;  %s2271_s5 = inlined_call_operand.hbm [shape: f32[8,128], index: 5, kind: output, shape index: {1}]   ;;  %s2272_s6 = inlined_call_operand.hbm [shape: f32[8,128], index: 6, kind: output, shape index: {2}]  }
   0x1   :  { %13 = vsyncpa [#allocation7], 0 }
   0x2   :  { %15 = vsyncpa [#allocation7 + $0x1], 0 }
   0x3   :  { %16 = vsyncpa [#allocation10], 0  ;;  %s1678_s21 = smov 0   ;;  %s1680_s22 = smov 0  }
   0x4   :  { %s1682_s23 = smov 0   ;;  %s1684_s24 = smov 0  }
   0x5 LB: > { %s1699_s25 = sadd.s32 4294967295, %s1633_s24   ;;  %s1288_s26 = sadd.s32 4294967294, %s1633_s24   ;;  %s1633_s24 = sphi %s1684_s24, %s2383_s24   ;;  %s1629_s23 = sphi %s1682_s23, %s2382_s23   ;;  %s1625_s22 = sphi %s1680_s22, %s2381_s22   ;;  %s1621_s21 = sphi %s1678_s21, %s2380_s21  }
   0x6   : > { %s1703_s27 = sadd.s32 1, %s1633_s24   ;;  %s118_s28 = sadd.s32 1, %s1629_s23 }
   0x7   : > { %s115_s29 = ssub.s32 %s1633_s24, %s1703_s27  ;;  %p128_p0 = scmp.ne.s32.totalorder %s1629_s23, %s1625_s22 }
   0x8   : > { %p116_p1 = scmp.eq.s32.totalorder %s115_s29, 0  ;;  %p129_p2 = scmp.eq.s32.totalorder %s1699_s25, 1 }
   0x9   : > { %p134_p3 = scmp.ne.s32.totalorder %s1625_s22, %s1621_s21  ;;  %p135_p4 = scmp.eq.s32.totalorder %s1288_s26, 1 }
   0xa   : > { %s1714_s30 = scalar_select %p116_p1, %s1629_s23, %s118_s28  }
   0xb   : > { %p1718_p5 = por %p129_p2, %p128_p0  ;;  %p1722_p6 = por %p135_p4, %p134_p3 }
   0xc   : > { %p1289_p7 = scmp.ge.s32.totalorder %s1633_s24, 1  ;;  %p184_p8 = scmp.lt.s32.totalorder %s1633_s24, 3 }
   0xd   : > { %p1290_p9 = scmp.ne.s32.totalorder %s1699_s25, 0  ;;  %p1366_p10 = scmp.eq.s32.totalorder %s1699_s25, 0 }
   0xe   : > { %p185_p11 = pnand %p1289_p7, %p184_p8  ;;  %s198_s11 = sshll.u32 %s2268_s2, 4  ;;  %s199_s11 = int_to_ptr.hbm [resolvable:$true] %s198_s11 }
   0xf   : > { %s1635_s12 = smov [#allocation5]   ;;  %s1636_s14 = smov 512  }
  0x10   : > { %p1358_p12 = pneg %p185_p11  ;;  %s200_s13 = sshll.u32 %s1635_s12, 4  ;;  %s201_s13 = int_to_ptr.vmem [resolvable:$true] %s200_s13 }
  0x11   : > { %s1637_s15 = smov 32   ;;  %228 = sbr.rel (%p185_p11) target bundleno = 791 (0x317), region = 36 }
  0x12   : > { %p1359_p13 = pnand %p1366_p10, %p1358_p12 }
  0x14   : > { %1361 = dma.hbm_to_vmem [thread:$0]  (!%p1359_p13), %s199_s11, 8192, %s201_s13, [#allocation6], %s1636_s14, %s1636_s14, %s1637_s15  }
  0x16   : > { %1608 = dma.done.wait (%p1366_p10), [#allocation6], 8192  }
  0x17   : > { %1610 = vsyncadd (%p1366_p10), [#allocation6], 4294959104  ;;  %s252_s16 = sand.u32 1, %s1625_s22   ;;  %s1295_s17 = sshll.u32 %s1699_s25, 2 }
  0x18   : > { %s1294_s18 = sshll.u32 %s252_s16, 5  ;;  %p260_p0 = scmp.lt.s32.totalorder %s1295_s17, 7 }
  0x19   : > { %s1748_s29 = scalar_lea.vmem [#allocation8], %s1294_s18  ;;  %269 = sbr.rel (%p1290_p9) target bundleno = 33 (0x21), region = 44 }
  0x1a   : > { %s2385_s17 = smov (!%p260_p0, %s1295_s17), 7 }
  0x1b   : > { %s1296_s19 = sshll.u32 %s2385_s17, 3 }
  0x1c   : > { %s1746_s28 = scalar_lea.vmem %s2266_s0, %s1296_s19 }
  0x1e   : > { %v1638_v0 = vmov 0.0  }
  0x1f   : > { %270 = vst [vmem:[#allocation2] sm:$0xff] %v1638_v0 }
  0x20   : > { %271 = vst [vmem:[#allocation3] sm:$0xff] %v1638_v0 }
  0x21 PF: > { %v276_v1 = vld [vmem:[%s2267_s1] sm:$0xff]  ;;  %v277_v2 = vld [vmem:[%s2267_s1 + $0x8] sm:$0xff]  ;;  %vm310_vm0 = vcmask 1043456   ;;  %vm297_vm1 = vcmask 31744   ;;  %v1759_v8 = vld [vmem:[#allocation5 + $0x1e0] sm:$0xff]  ;;  %p1333_p1 = scmp.ne.s32.totalorder %s1699_s25, 1 }
  0x22   : > { %290 = vst [vmem:[#allocation1] ss:$2 sm:$0xff] %v276_v1  ;;  %v272_v3 = vld [vmem:[%s1746_s28] sm:$0xff]  ;;  %v1765_v10 = vld [vmem:[#allocation5 + $0x1f0] sm:$0xff]  ;;  %v1767_v11 = vld [vmem:[#allocation5 + $0x1f8] sm:$0xff] }
  0x23   : > { %292 = vst [vmem:[#allocation1 + $0x10] ss:$2 sm:$0xff] %v277_v2  ;;  %v1761_v9 = vld [vmem:[#allocation5 + $0x1e8] sm:$0xff]  ;;  %v1771_v12 = vld [vmem:[#allocation5 + $0x1c0] sm:$0xff]  ;;  %v1777_v14 = vld [vmem:[#allocation5 + $0x1d0] sm:$0xff] }
  0x24   : > { %v1773_v13 = vld [vmem:[#allocation5 + $0x1c8] sm:$0xff]  ;;  %v1779_v15 = vld [vmem:[#allocation5 + $0x1d8] sm:$0xff]  ;;  %v1783_v16 = vld [vmem:[#allocation5 + $0x1a0] sm:$0xff] }
  0x25   : > { %v1785_v17 = vld [vmem:[#allocation5 + $0x1a8] sm:$0xff]  ;;  %v1789_v18 = vld [vmem:[#allocation5 + $0x1b0] sm:$0xff]  ;;  %v1791_v19 = vld [vmem:[#allocation5 + $0x1b8] sm:$0xff] }
  0x26   : > { %v1795_v20 = vld [vmem:[#allocation5 + $0x180] sm:$0xff]  ;;  %v1797_v21 = vld [vmem:[#allocation5 + $0x188] sm:$0xff]  ;;  %v1801_v22 = vld [vmem:[#allocation5 + $0x190] sm:$0xff] }
  0x27   : > { %v1803_v23 = vld [vmem:[#allocation5 + $0x198] sm:$0xff]  ;;  %v273_v24 = vld [vmem:[%s1746_s28 + $0x8] sm:$0xff]  ;;  %v1812_v25 = vld [vmem:[#allocation5 + $0x160] sm:$0xff] }
  0x28   : > { %v1814_v26 = vld [vmem:[#allocation5 + $0x168] sm:$0xff]  ;;  %v1818_v27 = vld [vmem:[#allocation5 + $0x170] sm:$0xff]  ;;  %v1820_v28 = vld [vmem:[#allocation5 + $0x178] sm:$0xff] }
  0x29   : > { %v293_v4 = vld.sshfl [vmem:[#allocation1] sm:$0xff pattern:$0x75316420]  ;;  %v294_v5 = vld.sshfl [vmem:[#allocation1 + $0x8] sm:$0xff pattern:$0x75316420] }
  0x2a   : > { %1298 = vmatpush.msk.msra.mxu0 %vm310_vm0, %v293_v4  ;;  %1303 = vmatpush.msk.msra.mxu1 %vm310_vm0, %v294_v5  ;;  %v295_v6 = vld.sshfl [vmem:[#allocation1 + $0x10] sm:$0xff pattern:$0x75316420]  ;;  %v296_v7 = vld.sshfl [vmem:[#allocation1 + $0x18] sm:$0xff pattern:$0x75316420] }
  0x2b   : > { %1308 = vmatpush.msk.msra.mxu2 %vm310_vm0, %v295_v6  ;;  %1313 = vmatpush.msk.msra.mxu3 %vm310_vm0, %v296_v7  ;;  %v1824_v29 = vld [vmem:[#allocation5 + $0x140] sm:$0xff]  ;;  %v1826_v30 = vld [vmem:[#allocation5 + $0x148] sm:$0xff]  ;;  %v1830_v31 = vld [vmem:[#allocation5 + $0x150] sm:$0xff] }
  0x2c   : > { %1299 = vmatmul.msk.f32.vlgmr.msra.gmra.mxu0 %vm297_vm1, %v272_v3  ;;  %1304 = vmatmul.msk.f32.vlgmr.msra.gmra.mxu1 %vm297_vm1, %v272_v3  ;;  %v1832_v32 = vld [vmem:[#allocation5 + $0x158] sm:$0xff]  ;;  %v1836_v33 = vld [vmem:[#allocation5 + $0x120] sm:$0xff]  ;;  %v1838_v34 = vld [vmem:[#allocation5 + $0x128] sm:$0xff] }
  0x2d   : > { %1309 = vmatmul.msk.f32.vlgmr.msra.gmra.mxu2 %vm297_vm1, %v272_v3  ;;  %1314 = vmatmul.msk.f32.vlgmr.msra.gmra.mxu3 %vm297_vm1, %v272_v3  ;;  %v1842_v35 = vld [vmem:[#allocation5 + $0x130] sm:$0xff]  ;;  %v1844_v36 = vld [vmem:[#allocation5 + $0x138] sm:$0xff]  ;;  %v1848_v37 = vld [vmem:[#allocation5 + $0x100] sm:$0xff] }
  0x2e   : > { %524 = vmatpush.msrb.mxu0 %v1759_v8  ;;  %544 = vmatpush.msrb.mxu1 %v1761_v9  ;;  %v1850_v38 = vld [vmem:[#allocation5 + $0x108] sm:$0xff]  ;;  %v1854_v39 = vld [vmem:[#allocation5 + $0x110] sm:$0xff]  ;;  %v1856_v40 = vld [vmem:[#allocation5 + $0x118] sm:$0xff] }
  0x2f   : > { %564 = vmatpush.msrb.mxu2 %v1765_v10  ;;  %584 = vmatpush.msrb.mxu3 %v1767_v11  ;;  %v274_v41 = vld [vmem:[%s1746_s28 + $0x10] sm:$0xff]  ;;  %v1865_v42 = vld [vmem:[#allocation5 + $0xe0] sm:$0xff]  ;;  %v1867_v43 = vld [vmem:[#allocation5 + $0xe8] sm:$0xff] }
  0x30   : > { %525 = vmatpush.msrb.mxu0 %v1771_v12  ;;  %545 = vmatpush.msrb.mxu1 %v1773_v13  ;;  %v1871_v44 = vld [vmem:[#allocation5 + $0xf0] sm:$0xff]  ;;  %v1873_v45 = vld [vmem:[#allocation5 + $0xf8] sm:$0xff]  ;;  %v1877_v46 = vld [vmem:[#allocation5 + $0xc0] sm:$0xff] }
  0x31   : > { %565 = vmatpush.msrb.mxu2 %v1777_v14  ;;  %585 = vmatpush.msrb.mxu3 %v1779_v15  ;;  %v1879_v47 = vld [vmem:[#allocation5 + $0xc8] sm:$0xff]  ;;  %v1883_v48 = vld [vmem:[#allocation5 + $0xd0] sm:$0xff]  ;;  %v1885_v49 = vld [vmem:[#allocation5 + $0xd8] sm:$0xff] }
  0x32   : > { %526 = vmatpush.msrb.mxu0 %v1783_v16  ;;  %546 = vmatpush.msrb.mxu1 %v1785_v17  ;;  %2303 = vst [vmem:[#allocation15_spill] sm:$0xff] %v1883_v48  ;;  %v1889_v50 = vld [vmem:[#allocation5 + $0xa0] sm:$0xff]  ;;  %v1891_v51 = vld [vmem:[#allocation5 + $0xa8] sm:$0xff]  ;;  %v1895_v52 = vld [vmem:[#allocation5 + $0xb0] sm:$0xff] }
  0x33   : > { %566 = vmatpush.msrb.mxu2 %v1789_v18  ;;  %586 = vmatpush.msrb.mxu3 %v1791_v19  ;;  %2304 = vst [vmem:[#allocation16_spill] sm:$0xff] %v1885_v49  ;;  %v1897_v53 = vld [vmem:[#allocation5 + $0xb8] sm:$0xff]  ;;  %v1901_v54 = vld [vmem:[#allocation5 + $0x80] sm:$0xff]  ;;  %v1903_v55 = vld [vmem:[#allocation5 + $0x88] sm:$0xff] }
  0x34   : > { %527 = vmatpush.msrb.mxu0 %v1795_v20  ;;  %547 = vmatpush.msrb.mxu1 %v1797_v21  ;;  %2305 = vst [vmem:[#allocation17_spill] sm:$0xff] %v1889_v50  ;;  %v1907_v56 = vld [vmem:[#allocation5 + $0x90] sm:$0xff]  ;;  %v1909_v57 = vld [vmem:[#allocation5 + $0x98] sm:$0xff]  ;;  %v275_v58 = vld [vmem:[%s1746_s28 + $0x18] sm:$0xff] }
  0x35   : > { %567 = vmatpush.msrb.mxu2 %v1801_v22  ;;  %587 = vmatpush.msrb.mxu3 %v1803_v23  ;;  %2306 = vst [vmem:[#allocation18_spill] sm:$0xff] %v1891_v51  ;;  %v1918_v59 = vld [vmem:[#allocation5 + $0x60] sm:$0xff]  ;;  %v1920_v60 = vld [vmem:[#allocation5 + $0x68] sm:$0xff]  ;;  %v1924_v61 = vld [vmem:[#allocation5 + $0x70] sm:$0xff] }
  0x36   : > { %1300 = vmatmul.msk.f32.gmra.mxu0 %vm297_vm1, %v273_v24  ;;  %1305 = vmatmul.msk.f32.gmra.mxu1 %vm297_vm1, %v273_v24  ;;  %2307 = vst [vmem:[#allocation19_spill] sm:$0xff] %v1895_v52  ;;  %v1926_v62 = vld [vmem:[#allocation5 + $0x78] sm:$0xff]  ;;  %v1930_v63 = vld [vmem:[#allocation5 + $0x40] sm:$0xff]  ;;  %v1932_v0 = vld [vmem:[#allocation5 + $0x48] sm:$0xff] }
  0x37   : > { %1310 = vmatmul.msk.f32.gmra.mxu2 %vm297_vm1, %v273_v24  ;;  %1315 = vmatmul.msk.f32.gmra.mxu3 %vm297_vm1, %v273_v24  ;;  %2308 = vst [vmem:[#allocation20_spill] sm:$0xff] %v1897_v53  ;;  %v1936_v1 = vld [vmem:[#allocation5 + $0x50] sm:$0xff]  ;;  %v1938_v2 = vld [vmem:[#allocation5 + $0x58] sm:$0xff]  ;;  %v1942_v3 = vld [vmem:[#allocation5 + $0x20] sm:$0xff] }
  0x38   : > { %528 = vmatpush.msrb.mxu0 %v1812_v25  ;;  %548 = vmatpush.msrb.mxu1 %v1814_v26  ;;  %2309 = vst [vmem:[#allocation21_spill] sm:$0xff] %v1901_v54  ;;  %v1944_v4 = vld [vmem:[#allocation5 + $0x28] sm:$0xff]  ;;  %v1948_v5 = vld [vmem:[#allocation5 + $0x30] sm:$0xff]  ;;  %v1950_v6 = vld [vmem:[#allocation5 + $0x38] sm:$0xff] }
  0x39   : > { %568 = vmatpush.msrb.mxu2 %v1818_v27  ;;  %588 = vmatpush.msrb.mxu3 %v1820_v28  ;;  %2310 = vst [vmem:[#allocation22_spill] sm:$0xff] %v1903_v55  ;;  %v1954_v7 = vld [vmem:[#allocation5] sm:$0xff]  ;;  %v1956_v24 = vld [vmem:[#allocation5 + $0x8] sm:$0xff] }
  0x3a   : > { %529 = vmatpush.msrb.mxu0 %v1824_v29  ;;  %549 = vmatpush.msrb.mxu1 %v1826_v30  ;;  %2311 = vst [vmem:[#allocation23_spill] sm:$0xff] %v1907_v56 }
  0x3b   : > { %569 = vmatpush.msrb.mxu2 %v1830_v31  ;;  %589 = vmatpush.msrb.mxu3 %v1832_v32  ;;  %2312 = vst [vmem:[#allocation24_spill] sm:$0xff] %v1909_v57 }
  0x3c   : > { %530 = vmatpush.msrb.mxu0 %v1836_v33  ;;  %550 = vmatpush.msrb.mxu1 %v1838_v34  ;;  %2313 = vst [vmem:[#allocation25_spill] sm:$0xff] %v1918_v59 }
  0x3d   : > { %570 = vmatpush.msrb.mxu2 %v1842_v35  ;;  %590 = vmatpush.msrb.mxu3 %v1844_v36  ;;  %2314 = vst [vmem:[#allocation26_spill] sm:$0xff] %v1920_v60 }
  0x3e   : > { %531 = vmatpush.msrb.mxu0 %v1848_v37  ;;  %551 = vmatpush.msrb.mxu1 %v1850_v38  ;;  %2315 = vst [vmem:[#allocation27_spill] sm:$0xff] %v1924_v61 }
  0x3f   : > { %571 = vmatpush.msrb.mxu2 %v1854_v39  ;;  %591 = vmatpush.msrb.mxu3 %v1856_v40  ;;  %2316 = vst [vmem:[#allocation28_spill] sm:$0xff] %v1926_v62 }
  0x40   : > { %1301 = vmatmul.msk.f32.gmra.mxu0 %vm297_vm1, %v274_v41  ;;  %1306 = vmatmul.msk.f32.gmra.mxu1 %vm297_vm1, %v274_v41  ;;  %2317 = vst [vmem:[#allocation29_spill] sm:$0xff] %v1930_v63 }
  0x41   : > { %1311 = vmatmul.msk.f32.gmra.mxu2 %vm297_vm1, %v274_v41  ;;  %1316 = vmatmul.msk.f32.gmra.mxu3 %vm297_vm1, %v274_v41  ;;  %2318 = vst [vmem:[#allocation30_spill] sm:$0xff] %v1932_v0  ;;  %v1960_v41 = vld [vmem:[#allocation5 + $0x10] sm:$0xff] }
  0x42   : > { %532 = vmatpush.msrb.mxu0 %v1865_v42  ;;  %552 = vmatpush.msrb.mxu1 %v1867_v43  ;;  %2319 = vst [vmem:[#allocation31_spill] sm:$0xff] %v1936_v1 }
  0x43   : > { %572 = vmatpush.msrb.mxu2 %v1871_v44  ;;  %592 = vmatpush.msrb.mxu3 %v1873_v45  ;;  %2320 = vst [vmem:[#allocation32_spill] sm:$0xff] %v1938_v2 }
  0x44   : > { %533 = vmatpush.msrb.mxu0 %v1877_v46  ;;  %553 = vmatpush.msrb.mxu1 %v1879_v47  ;;  %2321 = vst [vmem:[#allocation33_spill] sm:$0xff] %v1942_v3 }
  0x45   : > { %573 = vmatpush.msrb.mxu2 %v1883_v48  ;;  %593 = vmatpush.msrb.mxu3 %v1885_v49  ;;  %2322 = vst [vmem:[#allocation34_spill] sm:$0xff] %v1944_v4 }
  0x46   : > { %534 = vmatpush.msrb.mxu0 %v1889_v50  ;;  %554 = vmatpush.msrb.mxu1 %v1891_v51  ;;  %2323 = vst [vmem:[#allocation35_spill] sm:$0xff] %v1948_v5 }
  0x47   : > { %574 = vmatpush.msrb.mxu2 %v1895_v52  ;;  %594 = vmatpush.msrb.mxu3 %v1897_v53  ;;  %2324 = vst [vmem:[#allocation36_spill] sm:$0xff] %v1950_v6 }
  0x48   : > { %535 = vmatpush.msrb.mxu0 %v1901_v54  ;;  %555 = vmatpush.msrb.mxu1 %v1903_v55  ;;  %2325 = vst [vmem:[#allocation37_spill] sm:$0xff] %v1954_v7 }
  0x49   : > { %575 = vmatpush.msrb.mxu2 %v1907_v56  ;;  %595 = vmatpush.msrb.mxu3 %v1909_v57  ;;  %2326 = vst [vmem:[#allocation38_spill] sm:$0xff] %v1956_v24 }
  0x4a   : > { %1302 = vmatmul.msk.f32.gmra.mxu0 %vm297_vm1, %v275_v58  ;;  %1307 = vmatmul.msk.f32.gmra.mxu1 %vm297_vm1, %v275_v58  ;;  %2327 = vst [vmem:[#allocation39_spill] sm:$0xff] %v1960_v41 }
  0x4b   : > { %1312 = vmatmul.msk.f32.gmra.mxu2 %vm297_vm1, %v275_v58  ;;  %1317 = vmatmul.msk.f32.gmra.mxu3 %vm297_vm1, %v275_v58  ;;  %v1962_v58 = vld [vmem:[#allocation5 + $0x18] sm:$0xff] }
  0x4c   : > { %536 = vmatpush.msrb.mxu0 %v1918_v59  ;;  %556 = vmatpush.msrb.mxu1 %v1920_v60  ;;  %2328 = vst [vmem:[#allocation40_spill] sm:$0xff] %v1962_v58 }
  0x4d   : > { %576 = vmatpush.msrb.mxu2 %v1924_v61  ;;  %596 = vmatpush.msrb.mxu3 %v1926_v62 }
  0x4e   : > { %537 = vmatpush.msrb.mxu0 %v1930_v63  ;;  %557 = vmatpush.msrb.mxu1 %v1932_v0  ;;  %v515_v0 = vld [vmem:[#allocation2] sm:$0xff] }
  0x4f   : > { %577 = vmatpush.msrb.mxu2 %v1936_v1  ;;  %597 = vmatpush.msrb.mxu3 %v1938_v2 }
  0x50   : > { %538 = vmatpush.msrb.mxu0 %v1942_v3  ;;  %558 = vmatpush.msrb.mxu1 %v1944_v4 }
  0x51   : > { %578 = vmatpush.msrb.mxu2 %v1948_v5  ;;  %598 = vmatpush.msrb.mxu3 %v1950_v6 }
  0x52   : > { %539 = vmatpush.msrb.mxu0 %v1954_v7  ;;  %559 = vmatpush.msrb.mxu1 %v1956_v24 }
  0x53   : > { %579 = vmatpush.msrb.mxu2 %v1960_v41  ;;  %599 = vmatpush.msrb.mxu3 %v1962_v58 }
  0x54   : > { %540 = vmatmul.f32.vlgmr.msrb.gmra.mxu0 %v515_v0  ;;  %560 = vmatmul.f32.vlgmr.msrb.gmra.mxu1 %v515_v0 }
  0x55   : > { %580 = vmatmul.f32.vlgmr.msrb.gmra.mxu2 %v515_v0  ;;  %600 = vmatmul.f32.vlgmr.msrb.gmra.mxu3 %v515_v0  ;;  %v2329_v0 = vld [vmem:[#allocation30_spill] sm:$0xff] }
  0x56   : > { %679 = vmatpush.msra.mxu0 %v1759_v8  ;;  %699 = vmatpush.msra.mxu1 %v1761_v9 }
  0x57   : > { %719 = vmatpush.msra.mxu2 %v1765_v10  ;;  %739 = vmatpush.msra.mxu3 %v1767_v11 }
  0x58   : > { %680 = vmatpush.msra.mxu0 %v1771_v12  ;;  %700 = vmatpush.msra.mxu1 %v1773_v13 }
  0x59   : > { %720 = vmatpush.msra.mxu2 %v1777_v14  ;;  %740 = vmatpush.msra.mxu3 %v1779_v15 }
  0x5a   : > { %681 = vmatpush.msra.mxu0 %v1783_v16  ;;  %701 = vmatpush.msra.mxu1 %v1785_v17 }
  0x5b   : > { %721 = vmatpush.msra.mxu2 %v1789_v18  ;;  %741 = vmatpush.msra.mxu3 %v1791_v19 }
  0x5c   : > { %682 = vmatpush.msra.mxu0 %v1795_v20  ;;  %702 = vmatpush.msra.mxu1 %v1797_v21 }
  0x5d   : > { %722 = vmatpush.msra.mxu2 %v1801_v22  ;;  %742 = vmatpush.msra.mxu3 %v1803_v23 }
  0x5e   : > { %683 = vmatpush.msra.mxu0 %v1812_v25  ;;  %703 = vmatpush.msra.mxu1 %v1814_v26 }
  0x5f   : > { %723 = vmatpush.msra.mxu2 %v1818_v27  ;;  %743 = vmatpush.msra.mxu3 %v1820_v28 }
  0x60   : > { %684 = vmatpush.msra.mxu0 %v1824_v29  ;;  %704 = vmatpush.msra.mxu1 %v1826_v30 }
  0x61   : > { %724 = vmatpush.msra.mxu2 %v1830_v31  ;;  %744 = vmatpush.msra.mxu3 %v1832_v32 }
  0x62   : > { %685 = vmatpush.msra.mxu0 %v1836_v33  ;;  %705 = vmatpush.msra.mxu1 %v1838_v34 }
  0x63   : > { %725 = vmatpush.msra.mxu2 %v1842_v35  ;;  %745 = vmatpush.msra.mxu3 %v1844_v36 }
  0x64   : > { %686 = vmatpush.msra.mxu0 %v1848_v37  ;;  %706 = vmatpush.msra.mxu1 %v1850_v38 }
  0x65   : > { %726 = vmatpush.msra.mxu2 %v1854_v39  ;;  %746 = vmatpush.msra.mxu3 %v1856_v40 }
  0x66   : > { %687 = vmatpush.msra.mxu0 %v1865_v42  ;;  %707 = vmatpush.msra.mxu1 %v1867_v43 }
  0x67   : > { %727 = vmatpush.msra.mxu2 %v1871_v44  ;;  %747 = vmatpush.msra.mxu3 %v1873_v45 }
  0x68   : > { %688 = vmatpush.msra.mxu0 %v1877_v46  ;;  %708 = vmatpush.msra.mxu1 %v1879_v47 }
  0x69   : > { %728 = vmatpush.msra.mxu2 %v1883_v48  ;;  %748 = vmatpush.msra.mxu3 %v1885_v49 }
  0x6a   : > { %689 = vmatpush.msra.mxu0 %v1889_v50  ;;  %709 = vmatpush.msra.mxu1 %v1891_v51 }
  0x6b   : > { %729 = vmatpush.msra.mxu2 %v1895_v52  ;;  %749 = vmatpush.msra.mxu3 %v1897_v53 }
  0x6c   : > { %690 = vmatpush.msra.mxu0 %v1901_v54  ;;  %710 = vmatpush.msra.mxu1 %v1903_v55 }
  0x6d   : > { %730 = vmatpush.msra.mxu2 %v1907_v56  ;;  %750 = vmatpush.msra.mxu3 %v1909_v57 }
  0x6e   : > { %691 = vmatpush.msra.mxu0 %v1918_v59  ;;  %711 = vmatpush.msra.mxu1 %v1920_v60 }
  0x6f   : > { %731 = vmatpush.msra.mxu2 %v1924_v61  ;;  %751 = vmatpush.msra.mxu3 %v1926_v62 }
  0x70   : > { %692 = vmatpush.msra.mxu0 %v1930_v63  ;;  %712 = vmatpush.msra.mxu1 %v2329_v0 }
  0x71   : > { %732 = vmatpush.msra.mxu2 %v1936_v1  ;;  %752 = vmatpush.msra.mxu3 %v1938_v2 }
  0x72   : > { %693 = vmatpush.msra.mxu0 %v1942_v3  ;;  %713 = vmatpush.msra.mxu1 %v1944_v4 }
  0x73   : > { %733 = vmatpush.msra.mxu2 %v1948_v5  ;;  %753 = vmatpush.msra.mxu3 %v1950_v6 }
  0x74   : > { %694 = vmatpush.msra.mxu0 %v1954_v7  ;;  %714 = vmatpush.msra.mxu1 %v1956_v24 }
  0x75   : > { %734 = vmatpush.msra.mxu2 %v1960_v41  ;;  %754 = vmatpush.msra.mxu3 %v1962_v58 }
  0x76   : > { %835 = vmatpush.msrb.mxu0 %v1759_v8  ;;  %855 = vmatpush.msrb.mxu1 %v1761_v9 }
  0x77   : > { %875 = vmatpush.msrb.mxu2 %v1765_v10  ;;  %895 = vmatpush.msrb.mxu3 %v1767_v11 }
  0x78   : > { %836 = vmatpush.msrb.mxu0 %v1771_v12  ;;  %856 = vmatpush.msrb.mxu1 %v1773_v13 }
  0x79   : > { %876 = vmatpush.msrb.mxu2 %v1777_v14  ;;  %896 = vmatpush.msrb.mxu3 %v1779_v15 }
  0x7a   : > { %837 = vmatpush.msrb.mxu0 %v1783_v16  ;;  %857 = vmatpush.msrb.mxu1 %v1785_v17 }
  0x7b   : > { %877 = vmatpush.msrb.mxu2 %v1789_v18  ;;  %897 = vmatpush.msrb.mxu3 %v1791_v19 }
  0x7c   : > { %838 = vmatpush.msrb.mxu0 %v1795_v20  ;;  %858 = vmatpush.msrb.mxu1 %v1797_v21 }
  0x7d   : > { %878 = vmatpush.msrb.mxu2 %v1801_v22  ;;  %898 = vmatpush.msrb.mxu3 %v1803_v23 }
  0x7e   : > { %839 = vmatpush.msrb.mxu0 %v1812_v25  ;;  %859 = vmatpush.msrb.mxu1 %v1814_v26 }
  0x7f   : > { %879 = vmatpush.msrb.mxu2 %v1818_v27  ;;  %899 = vmatpush.msrb.mxu3 %v1820_v28 }
  0x80   : > { %840 = vmatpush.msrb.mxu0 %v1824_v29  ;;  %860 = vmatpush.msrb.mxu1 %v1826_v30 }
  0x81   : > { %880 = vmatpush.msrb.mxu2 %v1830_v31  ;;  %900 = vmatpush.msrb.mxu3 %v1832_v32 }
  0x82   : > { %841 = vmatpush.msrb.mxu0 %v1836_v33  ;;  %861 = vmatpush.msrb.mxu1 %v1838_v34 }
  0x83   : > { %881 = vmatpush.msrb.mxu2 %v1842_v35  ;;  %901 = vmatpush.msrb.mxu3 %v1844_v36 }
  0x84   : > { %842 = vmatpush.msrb.mxu0 %v1848_v37  ;;  %862 = vmatpush.msrb.mxu1 %v1850_v38 }
  0x85   : > { %882 = vmatpush.msrb.mxu2 %v1854_v39  ;;  %902 = vmatpush.msrb.mxu3 %v1856_v40 }
  0x86   : > { %843 = vmatpush.msrb.mxu0 %v1865_v42  ;;  %863 = vmatpush.msrb.mxu1 %v1867_v43 }
  0x87   : > { %883 = vmatpush.msrb.mxu2 %v1871_v44  ;;  %903 = vmatpush.msrb.mxu3 %v1873_v45 }
  0x88   : > { %844 = vmatpush.msrb.mxu0 %v1877_v46  ;;  %864 = vmatpush.msrb.mxu1 %v1879_v47 }
  0x89   : > { %884 = vmatpush.msrb.mxu2 %v1883_v48  ;;  %904 = vmatpush.msrb.mxu3 %v1885_v49 }
  0x8a   : > { %845 = vmatpush.msrb.mxu0 %v1889_v50  ;;  %865 = vmatpush.msrb.mxu1 %v1891_v51 }
  0x8b   : > { %885 = vmatpush.msrb.mxu2 %v1895_v52  ;;  %905 = vmatpush.msrb.mxu3 %v1897_v53 }
  0x8c   : > { %846 = vmatpush.msrb.mxu0 %v1901_v54  ;;  %866 = vmatpush.msrb.mxu1 %v1903_v55 }
  0x8d   : > { %886 = vmatpush.msrb.mxu2 %v1907_v56  ;;  %906 = vmatpush.msrb.mxu3 %v1909_v57 }
  0x8e   : > { %847 = vmatpush.msrb.mxu0 %v1918_v59  ;;  %867 = vmatpush.msrb.mxu1 %v1920_v60 }
  0x8f   : > { %887 = vmatpush.msrb.mxu2 %v1924_v61  ;;  %907 = vmatpush.msrb.mxu3 %v1926_v62 }
  0x90   : > { %848 = vmatpush.msrb.mxu0 %v1930_v63  ;;  %868 = vmatpush.msrb.mxu1 %v2329_v0 }
  0x91   : > { %888 = vmatpush.msrb.mxu2 %v1936_v1  ;;  %908 = vmatpush.msrb.mxu3 %v1938_v2 }
  0x92   : > { %849 = vmatpush.msrb.mxu0 %v1942_v3  ;;  %869 = vmatpush.msrb.mxu1 %v1944_v4  ;;  %v278_v3 = vld [vmem:[%s2269_s3] sm:$0xf] }
  0x93   : > { %889 = vmatpush.msrb.mxu2 %v1948_v5  ;;  %909 = vmatpush.msrb.mxu3 %v1950_v6  ;;  %v280_v63 = vperm.slane %v278_v3, 0  ;;  %v281_v5 = vperm.slane %v278_v3, 1 }
  0x94   : > { %850 = vmatpush.msrb.mxu0 %v1954_v7  ;;  %870 = vmatpush.msrb.mxu1 %v1956_v24  ;;  %v282_v24 = vperm.slane %v278_v3, 2 }
  0x95   : > { %890 = vmatpush.msrb.mxu2 %v1960_v41  ;;  %910 = vmatpush.msrb.mxu3 %v1962_v58  ;;  %v283_v41 = vperm.slane %v278_v3, 3 }
  0xa9   : > { %v336_v0 = vpop.f32.mrf.mxu0  ;;  %v365_v1 = vpop.f32.mrf.mxu1 }
  0xb0   : > { %v394_v2 = vpop.f32.mrf.mxu2  ;;  %v423_v4 = vpop.f32.mrf.mxu3 }
  0xb1   : > { %v395_v49 = vadd.f32 %v394_v2, %v282_v24 }
  0xb3   : > { %v339_v62 = vpop.f32.mrf.mxu0  ;;  %v368_v6 = vpop.f32.mrf.mxu1 }
  0xb4   : > { %v2101_v61 = vadd.f32 %v339_v62, %v280_v63  ;;  %v2103_v7 = vadd.f32 %v368_v6, %v281_v5 }
  0xb6   : > { %2330 = vst [vmem:[#allocation41_spill] sm:$0xff] %v2101_v61 }
  0xb7   : > { %2331 = vst [vmem:[#allocation42_spill] sm:$0xff] %v2103_v7 }
  0xba   : > { %v397_v60 = vpop.f32.mrf.mxu2  ;;  %v426_v58 = vpop.f32.mrf.mxu3 }
  0xbb   : > { %v2105_v59 = vadd.f32 %v397_v60, %v282_v24  ;;  %v2107_v57 = vadd.f32 %v426_v58, %v283_v41 }
  0xbd   : > { %2332 = vst [vmem:[#allocation43_spill] sm:$0xff] %v2105_v59  ;;  %v342_v56 = vpop.f32.mrf.mxu0  ;;  %v371_v55 = vpop.f32.mrf.mxu1 }
  0xbe   : > { %2333 = vst [vmem:[#allocation44_spill] sm:$0xff] %v2107_v57  ;;  %v2109_v54 = vadd.f32 %v342_v56, %v280_v63  ;;  %v2111_v53 = vadd.f32 %v371_v55, %v281_v5  ;;  %v337_v55 = vadd.f32 %v336_v0, %v280_v63 }
  0xc0   : > { %2334 = vst [vmem:[#allocation45_spill] sm:$0xff] %v2109_v54 }
  0xc1   : > { %2335 = vst [vmem:[#allocation46_spill] sm:$0xff] %v2111_v53  ;;  %v366_v53 = vadd.f32 %v365_v1, %v281_v5 }
  0xc4   : > { %v400_v52 = vpop.f32.mrf.mxu2  ;;  %v429_v51 = vpop.f32.mrf.mxu3 }
  0xc5   : > { %v2113_v62 = vadd.f32 %v400_v52, %v282_v24  ;;  %v2115_v6 = vadd.f32 %v429_v51, %v283_v41 }
  0xc7   : > { %2336 = vst [vmem:[#allocation47_spill] sm:$0xff] %v2113_v62  ;;  %v345_v7 = vpop.f32.mrf.mxu0  ;;  %v374_v3 = vpop.f32.mrf.mxu1 }
  0xc8   : > { %2337 = vst [vmem:[#allocation48_spill] sm:$0xff] %v2115_v6  ;;  %v2117_v61 = vadd.f32 %v345_v7, %v280_v63  ;;  %v2119_v60 = vadd.f32 %v374_v3, %v281_v5  ;;  %v424_v5 = vadd.f32 %v423_v4, %v283_v41 }
  0xca   : > { %2338 = vst [vmem:[#allocation49_spill] sm:$0xff] %v2117_v61 }
  0xcb   : > { %2339 = vst [vmem:[#allocation50_spill] sm:$0xff] %v2119_v60 }
  0xce   : > { %v403_v58 = vpop.f32.mrf.mxu2  ;;  %v432_v57 = vpop.f32.mrf.mxu3 }
  0xcf   : > { %v2121_v59 = vadd.f32 %v403_v58, %v282_v24  ;;  %v2123_v56 = vadd.f32 %v432_v57, %v283_v41 }
  0xd1   : > { %2340 = vst [vmem:[#allocation51_spill] sm:$0xff] %v2121_v59  ;;  %v541_v54 = vpop.f32.mrf.mxu0  ;;  %v561_v50 = vpop.f32.mrf.mxu1 }
  0xd2   : > { %2341 = vst [vmem:[#allocation52_spill] sm:$0xff] %v2123_v56  ;;  %v604_v52 = vadd.f32 %v541_v54, %v337_v55  ;;  %v605_v62 = vadd.f32 %v561_v50, %v366_v53 }
  0xd4   : > { %v1318_v51 = vmul.f32 -1.442695, %v604_v52  ;;  %v1319_v6 = vmul.f32 -1.442695, %v605_v62 }
  0xd6   : > { %1413 = vpow2.f32 %v1318_v51 }
  0xd7   : > { %1415 = vpow2.f32 %v1319_v6 }
  0xd8   : > { %v581_v7 = vpop.f32.mrf.mxu2  ;;  %v601_v63 = vpop.f32.mrf.mxu3 }
  0xd9   : > { %v606_v3 = vadd.f32 %v581_v7, %v395_v49  ;;  %v607_v53 = vadd.f32 %v601_v63, %v424_v5 }
  0xdb   : > { %v1320_v60 = vmul.f32 -1.442695, %v606_v3 }
  0xdc   : > { %v1414_v61 = vpop.eup %1413 }
  0xdd   : > { %v1416_v48 = vpop.eup %1415  ;;  %v617_v58 = vadd.f32 1.0, %v1414_v61  ;;  %1417 = vpow2.f32 %v1320_v60 }
  0xde   : > { %v618_v57 = vadd.f32 1.0, %v1416_v48 }
  0xdf   : > { %1419 = vrcp.f32 %v617_v58  ;;  %v631_v6 = vand.u32 2147483648, %v617_v58  ;;  %v629_v48 = vand.u32 2147483647, %v617_v58  ;;  %vm625_vm4 = vweird.f32 %v617_v58 }
  0xe0   : > { %1421 = vrcp.f32 %v618_v57  ;;  %v646_v55 = vand.u32 2147483648, %v618_v57  ;;  %v644_v52 = vand.u32 2147483647, %v618_v57  ;;  %vm640_vm5 = vweird.f32 %v618_v57 }
  0xe1   : > { %v632_v7 = vor.u32 1.1754944e-38, %v631_v6  ;;  %vm630_vm8 = vcmp.eq.f32.partialorder %v629_v48, 8.507059e+37 }
  0xe2   : > { %v647_v63 = vor.u32 1.1754944e-38, %v646_v55  ;;  %vm645_vm9 = vcmp.eq.f32.partialorder %v644_v52, 8.507059e+37 }
  0xe3   : > { %v1418_v1 = vpop.eup %1417 }
  0xe4   : > { %v619_v54 = vadd.f32 1.0, %v1418_v1  ;;  %v516_v1 = vld [vmem:[#allocation3] sm:$0xff] }
  0xe5   : > { %v1420_v50 = vpop.eup %1419 }
  0xe6   : > { %v1422_v0 = vpop.eup %1421  ;;  %v621_v62 = vmul.f32 %v1420_v50, %v617_v58  ;;  %1423 = vrcp.f32 %v619_v54  ;;  %vm626_vm2 = vweird.f32 %v1420_v50  ;;  %vm655_vm11 = vweird.f32 %v619_v54 }
  0xe7   : > { %v636_v2 = vmul.f32 %v1422_v0, %v618_v57  ;;  %1425 = vtanh.f32 %v607_v53  ;;  %vm641_vm3 = vweird.f32 %v1422_v0  ;;  %vm627_vm6 = vmor %vm625_vm4, %vm626_vm2 }
  0xe8   : > { %v622_v24 = vsub.f32 1.0, %v621_v62  ;;  %vm642_vm7 = vmor %vm640_vm5, %vm641_vm3 }
  0xe9   : > { %v637_v49 = vsub.f32 1.0, %v636_v2 }
  0xea   : > { %v623_v61 = vmul.f32 %v1420_v50, %v622_v24 }
  0xeb   : > { %v638_v60 = vmul.f32 %v1422_v0, %v637_v49 }
  0xec   : > { %v1424_v51 = vpop.eup %1423  ;;  %v624_v4 = vadd.f32 %v1420_v50, %v623_v61  ;;  %v661_v61 = vand.u32 2147483648, %v619_v54 }
  0xed   : > { %v651_v41 = vmul.f32 %v1424_v51, %v619_v54  ;;  %v639_v3 = vadd.f32 %v1422_v0, %v638_v60  ;;  %v1426_v53 = vpop.eup %1425  ;;  %vm656_vm10 = vweird.f32 %v1424_v51 }
  0xee   : > { %v628_v5 = vsel %vm627_vm6, %v1420_v50, %v624_v4  ;;  %v659_v50 = vand.u32 2147483647, %v619_v54  ;;  %vm657_vm12 = vmor %vm655_vm11, %vm656_vm10  ;;  %v662_v48 = vor.u32 1.1754944e-38, %v661_v61 }
  0xef   : > { %v652_v62 = vsub.f32 1.0, %v651_v41  ;;  %v633_v2 = vsel %vm630_vm8, %v632_v7, %v628_v5  ;;  %v643_v24 = vsel %vm642_vm7, %v1422_v0, %v639_v3 }
  0xf0   : > { %v648_v49 = vsel %vm645_vm9, %v647_v63, %v643_v24  ;;  %v667_v56 = vmul.f32 %v1426_v53, %v633_v2  ;;  %vm660_vm13 = vcmp.eq.f32.partialorder %v659_v50, 8.507059e+37  ;;  %v2371_v63 = vld [vmem:[#allocation44_spill] sm:$0xff] }
  0xf1   : > { %v653_v59 = vmul.f32 %v1424_v51, %v652_v62  ;;  %v666_v58 = vmul.f32 %v648_v49, %v516_v1 }
  0xf3   : > { %v2125_v57 = vadd.f32 %v667_v56, %v666_v58  ;;  %v654_v6 = vadd.f32 %v1424_v51, %v653_v59 }
  0xf5   : > { %1427 = vtanh.f32 %v2125_v57  ;;  %v658_v55 = vsel %vm657_vm12, %v1424_v51, %v654_v6 }
  0xf6   : > { %v663_v60 = vsel %vm660_vm13, %v662_v48, %v658_v55 }
  0xfb   : > { %v1428_v0 = vpop.eup %1427 }
  0xfc   : > { %v670_v52 = vmul.f32 %v1428_v0, %v663_v60 }
  0xfe   : > { %671 = vst [vmem:[%s1748_s29] sm:$0xff] %v670_v52  ;;  %695 = vmatmul.f32.vlgmr.msra.gmra.mxu0 %v670_v52  ;;  %715 = vmatmul.f32.vlgmr.msra.gmra.mxu1 %v670_v52 }
  0xff   : > { %735 = vmatmul.f32.vlgmr.msra.gmra.mxu2 %v670_v52  ;;  %755 = vmatmul.f32.vlgmr.msra.gmra.mxu3 %v670_v52 }
 0x100   : > { %991 = vmatpush.msra.mxu0 %v1759_v8  ;;  %1011 = vmatpush.msra.mxu1 %v1761_v9  ;;  %v2342_v8 = vld [vmem:[#allocation15_spill] sm:$0xff]  ;;  %v2343_v9 = vld [vmem:[#allocation16_spill] sm:$0xff] }
 0x101   : > { %1031 = vmatpush.msra.mxu2 %v1765_v10  ;;  %1051 = vmatpush.msra.mxu3 %v1767_v11  ;;  %v2344_v10 = vld [vmem:[#allocation17_spill] sm:$0xff]  ;;  %v2345_v11 = vld [vmem:[#allocation18_spill] sm:$0xff] }
 0x102   : > { %992 = vmatpush.msra.mxu0 %v1771_v12  ;;  %1012 = vmatpush.msra.mxu1 %v1773_v13  ;;  %v2346_v12 = vld [vmem:[#allocation19_spill] sm:$0xff]  ;;  %v2347_v13 = vld [vmem:[#allocation20_spill] sm:$0xff] }
 0x103   : > { %1032 = vmatpush.msra.mxu2 %v1777_v14  ;;  %1052 = vmatpush.msra.mxu3 %v1779_v15  ;;  %v2348_v14 = vld [vmem:[#allocation21_spill] sm:$0xff]  ;;  %v2349_v15 = vld [vmem:[#allocation22_spill] sm:$0xff] }
 0x104   : > { %993 = vmatpush.msra.mxu0 %v1783_v16  ;;  %1013 = vmatpush.msra.mxu1 %v1785_v17  ;;  %v2350_v16 = vld [vmem:[#allocation23_spill] sm:$0xff]  ;;  %v2351_v17 = vld [vmem:[#allocation24_spill] sm:$0xff] }
 0x105   : > { %1033 = vmatpush.msra.mxu2 %v1789_v18  ;;  %1053 = vmatpush.msra.mxu3 %v1791_v19  ;;  %v2352_v18 = vld [vmem:[#allocation25_spill] sm:$0xff]  ;;  %v2353_v19 = vld [vmem:[#allocation26_spill] sm:$0xff] }
 0x106   : > { %994 = vmatpush.msra.mxu0 %v1795_v20  ;;  %1014 = vmatpush.msra.mxu1 %v1797_v21  ;;  %v2354_v20 = vld [vmem:[#allocation27_spill] sm:$0xff]  ;;  %v2355_v21 = vld [vmem:[#allocation28_spill] sm:$0xff] }
 0x107   : > { %1034 = vmatpush.msra.mxu2 %v1801_v22  ;;  %1054 = vmatpush.msra.mxu3 %v1803_v23  ;;  %v2356_v22 = vld [vmem:[#allocation29_spill] sm:$0xff]  ;;  %v2357_v23 = vld [vmem:[#allocation30_spill] sm:$0xff] }
 0x108   : > { %995 = vmatpush.msra.mxu0 %v1812_v25  ;;  %1015 = vmatpush.msra.mxu1 %v1814_v26  ;;  %v2358_v25 = vld [vmem:[#allocation31_spill] sm:$0xff]  ;;  %v2359_v26 = vld [vmem:[#allocation32_spill] sm:$0xff] }
 0x109   : > { %1035 = vmatpush.msra.mxu2 %v1818_v27  ;;  %1055 = vmatpush.msra.mxu3 %v1820_v28  ;;  %v2360_v27 = vld [vmem:[#allocation33_spill] sm:$0xff]  ;;  %v2361_v28 = vld [vmem:[#allocation34_spill] sm:$0xff] }
 0x10a   : > { %996 = vmatpush.msra.mxu0 %v1824_v29  ;;  %1016 = vmatpush.msra.mxu1 %v1826_v30  ;;  %v2362_v29 = vld [vmem:[#allocation35_spill] sm:$0xff]  ;;  %v2363_v30 = vld [vmem:[#allocation36_spill] sm:$0xff] }
 0x10b   : > { %1036 = vmatpush.msra.mxu2 %v1830_v31  ;;  %1056 = vmatpush.msra.mxu3 %v1832_v32  ;;  %v2364_v31 = vld [vmem:[#allocation37_spill] sm:$0xff]  ;;  %v2365_v32 = vld [vmem:[#allocation38_spill] sm:$0xff] }
 0x10c   : > { %997 = vmatpush.msra.mxu0 %v1836_v33  ;;  %1017 = vmatpush.msra.mxu1 %v1838_v34  ;;  %v2366_v33 = vld [vmem:[#allocation39_spill] sm:$0xff]  ;;  %v2367_v34 = vld [vmem:[#allocation40_spill] sm:$0xff] }
 0x10d   : > { %1037 = vmatpush.msra.mxu2 %v1842_v35  ;;  %1057 = vmatpush.msra.mxu3 %v1844_v36 }
 0x10e   : > { %998 = vmatpush.msra.mxu0 %v1848_v37  ;;  %1018 = vmatpush.msra.mxu1 %v1850_v38  ;;  %v2368_v37 = vld [vmem:[#allocation41_spill] sm:$0xff] }
 0x10f   : > { %1038 = vmatpush.msra.mxu2 %v1854_v39  ;;  %1058 = vmatpush.msra.mxu3 %v1856_v40  ;;  %v2369_v39 = vld [vmem:[#allocation42_spill] sm:$0xff] }
 0x110   : > { %999 = vmatpush.msra.mxu0 %v1865_v42  ;;  %1019 = vmatpush.msra.mxu1 %v1867_v43 }
 0x111   : > { %1039 = vmatpush.msra.mxu2 %v1871_v44  ;;  %1059 = vmatpush.msra.mxu3 %v1873_v45  ;;  %v2370_v45 = vld [vmem:[#allocation43_spill] sm:$0xff] }
 0x112   : > { %1000 = vmatpush.msra.mxu0 %v1877_v46  ;;  %1020 = vmatpush.msra.mxu1 %v1879_v47 }
 0x113   : > { %1040 = vmatpush.msra.mxu2 %v2342_v8  ;;  %1060 = vmatpush.msra.mxu3 %v2343_v9 }
 0x114   : > { %1001 = vmatpush.msra.mxu0 %v2344_v10  ;;  %1021 = vmatpush.msra.mxu1 %v2345_v11 }
 0x115   : > { %1041 = vmatpush.msra.mxu2 %v2346_v12  ;;  %1061 = vmatpush.msra.mxu3 %v2347_v13 }
 0x116   : > { %1002 = vmatpush.msra.mxu0 %v2348_v14  ;;  %1022 = vmatpush.msra.mxu1 %v2349_v15 }
 0x117   : > { %1042 = vmatpush.msra.mxu2 %v2350_v16  ;;  %1062 = vmatpush.msra.mxu3 %v2351_v17 }
 0x118   : > { %1003 = vmatpush.msra.mxu0 %v2352_v18  ;;  %1023 = vmatpush.msra.mxu1 %v2353_v19 }
 0x119   : > { %1043 = vmatpush.msra.mxu2 %v2354_v20  ;;  %1063 = vmatpush.msra.mxu3 %v2355_v21 }
 0x11a   : > { %1004 = vmatpush.msra.mxu0 %v2356_v22  ;;  %1024 = vmatpush.msra.mxu1 %v2357_v23 }
 0x11b   : > { %1044 = vmatpush.msra.mxu2 %v2358_v25  ;;  %1064 = vmatpush.msra.mxu3 %v2359_v26 }
 0x11c   : > { %1005 = vmatpush.msra.mxu0 %v2360_v27  ;;  %1025 = vmatpush.msra.mxu1 %v2361_v28 }
 0x11d   : > { %1045 = vmatpush.msra.mxu2 %v2362_v29  ;;  %1065 = vmatpush.msra.mxu3 %v2363_v30  ;;  %v2372_v30 = vld [vmem:[#allocation45_spill] sm:$0xff] }
 0x11e   : > { %1006 = vmatpush.msra.mxu0 %v2364_v31  ;;  %1026 = vmatpush.msra.mxu1 %v2365_v32  ;;  %v2373_v32 = vld [vmem:[#allocation46_spill] sm:$0xff] }
 0x11f   : > { %1046 = vmatpush.msra.mxu2 %v2366_v33  ;;  %1066 = vmatpush.msra.mxu3 %v2367_v34 }
 0x17b   : > { %v696_v35 = vpop.f32.mrf.mxu0  ;;  %v716_v36 = vpop.f32.mrf.mxu1 }
 0x17c   : > { %v759_v38 = vadd.f32 %v696_v35, %v2368_v37  ;;  %v760_v40 = vadd.f32 %v716_v36, %v2369_v39  ;;  %v2374_v37 = vld [vmem:[#allocation47_spill] sm:$0xff] }
 0x17e   : > { %v1321_v42 = vmul.f32 -1.442695, %v759_v38  ;;  %v1322_v43 = vmul.f32 -1.442695, %v760_v40 }
 0x180   : > { %1429 = vpow2.f32 %v1321_v42 }
 0x181   : > { %1431 = vpow2.f32 %v1322_v43 }
 0x182   : > { %v736_v44 = vpop.f32.mrf.mxu2  ;;  %v756_v4 = vpop.f32.mrf.mxu3 }
 0x183   : > { %v761_v46 = vadd.f32 %v736_v44, %v2370_v45  ;;  %v762_v1 = vadd.f32 %v756_v4, %v2371_v63 }
 0x185   : > { %v1323_v47 = vmul.f32 -1.442695, %v761_v46 }
 0x186   : > { %v1430_v59 = vpop.eup %1429 }
 0x187   : > { %v1432_v56 = vpop.eup %1431  ;;  %v772_v54 = vadd.f32 1.0, %v1430_v59  ;;  %1433 = vpow2.f32 %v1323_v47 }
 0x188   : > { %v773_v51 = vadd.f32 1.0, %v1432_v56  ;;  %v2375_v56 = vld [vmem:[#allocation48_spill] sm:$0xff] }
 0x189   : > { %1435 = vrcp.f32 %v772_v54  ;;  %v786_v49 = vand.u32 2147483648, %v772_v54  ;;  %v784_v61 = vand.u32 2147483647, %v772_v54  ;;  %vm780_vm0 = vweird.f32 %v772_v54 }
 0x18a   : > { %1437 = vrcp.f32 %v773_v51  ;;  %v801_v58 = vand.u32 2147483648, %v773_v51  ;;  %v799_v55 = vand.u32 2147483647, %v773_v51  ;;  %vm795_vm1 = vweird.f32 %v773_v51 }
 0x18b   : > { %v787_v52 = vor.u32 1.1754944e-38, %v786_v49  ;;  %vm785_vm4 = vcmp.eq.f32.partialorder %v784_v61, 8.507059e+37 }
 0x18c   : > { %v802_v9 = vor.u32 1.1754944e-38, %v801_v58  ;;  %vm800_vm5 = vcmp.eq.f32.partialorder %v799_v55, 8.507059e+37 }
 0x18d   : > { %v1434_v41 = vpop.eup %1433 }
 0x18e   : > { %v774_v7 = vadd.f32 1.0, %v1434_v41 }
 0x18f   : > { %v1436_v3 = vpop.eup %1435 }
 0x190   : > { %v1438_v5 = vpop.eup %1437  ;;  %v776_v53 = vmul.f32 %v1436_v3, %v772_v54  ;;  %1439 = vrcp.f32 %v774_v7  ;;  %vm781_vm14 = vweird.f32 %v1436_v3  ;;  %v816_v21 = vand.u32 2147483648, %v774_v7 }
 0x191   : > { %v791_v62 = vmul.f32 %v1438_v5, %v773_v51  ;;  %1441 = vtanh.f32 %v762_v1  ;;  %vm796_vm15 = vweird.f32 %v1438_v5  ;;  %vm782_vm2 = vmor %vm780_vm0, %vm781_vm14  ;;  %vm810_vm7 = vweird.f32 %v774_v7 }
 0x192   : > { %v777_v2 = vsub.f32 1.0, %v776_v53  ;;  %vm797_vm3 = vmor %vm795_vm1, %vm796_vm15  ;;  %v814_v22 = vand.u32 2147483647, %v774_v7  ;;  %v817_v25 = vor.u32 1.1754944e-38, %v816_v21 }
 0x193   : > { %v792_v24 = vsub.f32 1.0, %v791_v62 }
 0x194   : > { %v778_v6 = vmul.f32 %v1436_v3, %v777_v2  ;;  %vm815_vm9 = vcmp.eq.f32.partialorder %v814_v22, 8.507059e+37 }
 0x195   : > { %v793_v50 = vmul.f32 %v1438_v5, %v792_v24 }
 0x196   : > { %v1440_v48 = vpop.eup %1439  ;;  %v779_v0 = vadd.f32 %v1436_v3, %v778_v6 }
 0x197   : > { %v806_v60 = vmul.f32 %v1440_v48, %v774_v7  ;;  %v794_v8 = vadd.f32 %v1438_v5, %v793_v50  ;;  %v1442_v11 = vpop.eup %1441  ;;  %vm811_vm6 = vweird.f32 %v1440_v48 }
 0x198   : > { %v783_v10 = vsel %vm782_vm2, %v1436_v3, %v779_v0  ;;  %vm812_vm8 = vmor %vm810_vm7, %vm811_vm6 }
 0x199   : > { %v807_v12 = vsub.f32 1.0, %v806_v60  ;;  %v788_v13 = vsel %vm785_vm4, %v787_v52, %v783_v10  ;;  %v798_v14 = vsel %vm797_vm3, %v1438_v5, %v794_v8 }
 0x19a   : > { %v803_v15 = vsel %vm800_vm5, %v802_v9, %v798_v14  ;;  %v822_v16 = vmul.f32 %v1442_v11, %v788_v13 }
 0x19b   : > { %v808_v17 = vmul.f32 %v1440_v48, %v807_v12  ;;  %v821_v18 = vmul.f32 %v803_v15, %v2125_v57 }
 0x19d   : > { %v2198_v19 = vadd.f32 %v822_v16, %v821_v18  ;;  %v809_v20 = vadd.f32 %v1440_v48, %v808_v17 }
 0x19f   : > { %1443 = vtanh.f32 %v2198_v19  ;;  %v813_v23 = vsel %vm812_vm8, %v1440_v48, %v809_v20 }
 0x1a0   : > { %v818_v27 = vsel %vm815_vm9, %v817_v25, %v813_v23  ;;  %v2376_v23 = vld [vmem:[#allocation49_spill] sm:$0xff] }
 0x1a5   : > { %v1444_v26 = vpop.eup %1443 }
 0x1a6   : > { %v825_v28 = vmul.f32 %v1444_v26, %v818_v27  ;;  %v2377_v26 = vld [vmem:[#allocation50_spill] sm:$0xff] }
 0x1a8   : > { %1324 = vst [vmem:[%s1748_s29 + $0x8] sm:$0xff] %v825_v28  ;;  %851 = vmatmul.f32.vlgmr.msrb.gmra.mxu0 %v825_v28  ;;  %871 = vmatmul.f32.vlgmr.msrb.gmra.mxu1 %v825_v28 }
 0x1a9   : > { %891 = vmatmul.f32.vlgmr.msrb.gmra.mxu2 %v825_v28  ;;  %911 = vmatmul.f32.vlgmr.msrb.gmra.mxu3 %v825_v28 }
 0x225   : > { %v852_v57 = vpop.f32.mrf.mxu0  ;;  %v872_v29 = vpop.f32.mrf.mxu1 }
 0x226   : > { %v915_v31 = vadd.f32 %v852_v57, %v2372_v30  ;;  %v916_v33 = vadd.f32 %v872_v29, %v2373_v32  ;;  %v2378_v30 = vld [vmem:[#allocation51_spill] sm:$0xff] }
 0x228   : > { %v1325_v34 = vmul.f32 -1.442695, %v915_v31  ;;  %v1326_v35 = vmul.f32 -1.442695, %v916_v33 }
 0x22a   : > { %1445 = vpow2.f32 %v1325_v34 }
 0x22b   : > { %1447 = vpow2.f32 %v1326_v35 }
 0x22c   : > { %v892_v36 = vpop.f32.mrf.mxu2  ;;  %v912_v45 = vpop.f32.mrf.mxu3 }
 0x22d   : > { %v917_v38 = vadd.f32 %v892_v36, %v2374_v37  ;;  %v918_v54 = vadd.f32 %v912_v45, %v2375_v56 }
 0x22f   : > { %v1327_v39 = vmul.f32 -1.442695, %v917_v38 }
 0x230   : > { %v1446_v40 = vpop.eup %1445 }
 0x231   : > { %v1448_v42 = vpop.eup %1447  ;;  %v928_v43 = vadd.f32 1.0, %v1446_v40  ;;  %1449 = vpow2.f32 %v1327_v39 }
 0x232   : > { %v929_v44 = vadd.f32 1.0, %v1448_v42  ;;  %v2379_v42 = vld [vmem:[#allocation52_spill] sm:$0xff] }
 0x233   : > { %1451 = vrcp.f32 %v928_v43  ;;  %v942_v63 = vand.u32 2147483648, %v928_v43  ;;  %v940_v53 = vand.u32 2147483647, %v928_v43  ;;  %vm936_vm12 = vweird.f32 %v928_v43 }
 0x234   : > { %1453 = vrcp.f32 %v929_v44  ;;  %v957_v1 = vand.u32 2147483648, %v929_v44  ;;  %v955_v2 = vand.u32 2147483647, %v929_v44  ;;  %vm951_vm13 = vweird.f32 %v929_v44 }
 0x235   : > { %v943_v6 = vor.u32 1.1754944e-38, %v942_v63  ;;  %vm941_vm0 = vcmp.eq.f32.partialorder %v940_v53, 8.507059e+37 }
 0x236   : > { %v958_v50 = vor.u32 1.1754944e-38, %v957_v1  ;;  %vm956_vm1 = vcmp.eq.f32.partialorder %v955_v2, 8.507059e+37 }
 0x237   : > { %v1450_v46 = vpop.eup %1449 }
 0x238   : > { %v930_v47 = vadd.f32 1.0, %v1450_v46 }
 0x239   : > { %v1452_v59 = vpop.eup %1451 }
 0x23a   : > { %v1454_v51 = vpop.eup %1453  ;;  %v932_v4 = vmul.f32 %v1452_v59, %v928_v43  ;;  %1455 = vrcp.f32 %v930_v47  ;;  %vm937_vm10 = vweird.f32 %v1452_v59  ;;  %v972_v14 = vand.u32 2147483648, %v930_v47 }
 0x23b   : > { %v947_v41 = vmul.f32 %v1454_v51, %v929_v44  ;;  %1457 = vtanh.f32 %v918_v54  ;;  %vm952_vm11 = vweird.f32 %v1454_v51  ;;  %vm938_vm14 = vmor %vm936_vm12, %vm937_vm10  ;;  %vm966_vm3 = vweird.f32 %v930_v47 }
 0x23c   : > { %v933_v7 = vsub.f32 1.0, %v932_v4  ;;  %vm953_vm15 = vmor %vm951_vm13, %vm952_vm11  ;;  %v970_v15 = vand.u32 2147483647, %v930_v47  ;;  %v973_v17 = vor.u32 1.1754944e-38, %v972_v14 }
 0x23d   : > { %v948_v3 = vsub.f32 1.0, %v947_v41 }
 0x23e   : > { %v934_v5 = vmul.f32 %v1452_v59, %v933_v7  ;;  %vm971_vm5 = vcmp.eq.f32.partialorder %v970_v15, 8.507059e+37 }
 0x23f   : > { %v949_v62 = vmul.f32 %v1454_v51, %v948_v3 }
 0x240   : > { %v1456_v24 = vpop.eup %1455  ;;  %v935_v49 = vadd.f32 %v1452_v59, %v934_v5 }
 0x241   : > { %v962_v58 = vmul.f32 %v1456_v24, %v930_v47  ;;  %v950_v61 = vadd.f32 %v1454_v51, %v949_v62  ;;  %v1458_v48 = vpop.eup %1457  ;;  %vm967_vm2 = vweird.f32 %v1456_v24 }
 0x242   : > { %v939_v55 = vsel %vm938_vm14, %v1452_v59, %v935_v49  ;;  %vm968_vm4 = vmor %vm966_vm3, %vm967_vm2 }
 0x243   : > { %v963_v0 = vsub.f32 1.0, %v962_v58  ;;  %v944_v60 = vsel %vm941_vm0, %v943_v6, %v939_v55  ;;  %v954_v52 = vsel %vm953_vm15, %v1454_v51, %v950_v61 }
 0x244   : > { %v959_v8 = vsel %vm956_vm1, %v958_v50, %v954_v52  ;;  %v978_v9 = vmul.f32 %v1458_v48, %v944_v60 }
 0x245   : > { %v964_v10 = vmul.f32 %v1456_v24, %v963_v0  ;;  %v977_v11 = vmul.f32 %v959_v8, %v2198_v19 }
 0x247   : > { %v2207_v12 = vadd.f32 %v978_v9, %v977_v11  ;;  %v965_v13 = vadd.f32 %v1456_v24, %v964_v10 }
 0x249   : > { %1459 = vtanh.f32 %v2207_v12  ;;  %v969_v16 = vsel %vm968_vm4, %v1456_v24, %v965_v13 }
 0x24a   : > { %v974_v20 = vsel %vm971_vm5, %v973_v17, %v969_v16 }
 0x24f   : > { %v1460_v18 = vpop.eup %1459 }
 0x250   : > { %v981_v21 = vmul.f32 %v1460_v18, %v974_v20 }
 0x252   : > { %1328 = vst [vmem:[%s1748_s29 + $0x10] sm:$0xff] %v981_v21  ;;  %1007 = vmatmul.f32.vlgmr.msra.gmra.mxu0 %v981_v21  ;;  %1027 = vmatmul.f32.vlgmr.msra.gmra.mxu1 %v981_v21 }
 0x253   : > { %1047 = vmatmul.f32.vlgmr.msra.gmra.mxu2 %v981_v21  ;;  %1067 = vmatmul.f32.vlgmr.msra.gmra.mxu3 %v981_v21 }
 0x2cf   : > { %v1008_v19 = vpop.f32.mrf.mxu0  ;;  %v1028_v22 = vpop.f32.mrf.mxu1 }
 0x2d0   : > { %v1071_v25 = vadd.f32 %v1008_v19, %v2376_v23  ;;  %v1072_v27 = vadd.f32 %v1028_v22, %v2377_v26 }
 0x2d2   : > { %v1329_v28 = vmul.f32 -1.442695, %v1071_v25  ;;  %v1330_v57 = vmul.f32 -1.442695, %v1072_v27 }
 0x2d4   : > { %1461 = vpow2.f32 %v1329_v28 }
 0x2d5   : > { %1463 = vpow2.f32 %v1330_v57 }
 0x2d6   : > { %v1048_v29 = vpop.f32.mrf.mxu2  ;;  %v1068_v37 = vpop.f32.mrf.mxu3 }
 0x2d7   : > { %v1073_v31 = vadd.f32 %v1048_v29, %v2378_v30  ;;  %v1074_v43 = vadd.f32 %v1068_v37, %v2379_v42 }
 0x2d9   : > { %v1331_v32 = vmul.f32 -1.442695, %v1073_v31 }
 0x2da   : > { %v1462_v33 = vpop.eup %1461 }
 0x2db   : > { %v1464_v34 = vpop.eup %1463  ;;  %v1084_v35 = vadd.f32 1.0, %v1462_v33  ;;  %1465 = vpow2.f32 %v1331_v32 }
 0x2dc   : > { %v1085_v36 = vadd.f32 1.0, %v1464_v34 }
 0x2dd   : > { %1467 = vrcp.f32 %v1084_v35  ;;  %v1098_v56 = vand.u32 2147483648, %v1084_v35  ;;  %v1096_v4 = vand.u32 2147483647, %v1084_v35  ;;  %vm1092_vm8 = vweird.f32 %v1084_v35 }
 0x2de   : > { %1469 = vrcp.f32 %v1085_v36  ;;  %v1113_v54 = vand.u32 2147483648, %v1085_v36  ;;  %v1111_v7 = vand.u32 2147483647, %v1085_v36  ;;  %vm1107_vm9 = vweird.f32 %v1085_v36 }
 0x2df   : > { %v1099_v5 = vor.u32 1.1754944e-38, %v1098_v56  ;;  %vm1097_vm12 = vcmp.eq.f32.partialorder %v1096_v4, 8.507059e+37 }
 0x2e0   : > { %v1114_v62 = vor.u32 1.1754944e-38, %v1113_v54  ;;  %vm1112_vm13 = vcmp.eq.f32.partialorder %v1111_v7, 8.507059e+37 }
 0x2e1   : > { %v1466_v38 = vpop.eup %1465 }
 0x2e2   : > { %v1086_v39 = vadd.f32 1.0, %v1466_v38 }
 0x2e3   : > { %v1468_v40 = vpop.eup %1467 }
 0x2e4   : > { %v1470_v44 = vpop.eup %1469  ;;  %v1088_v45 = vmul.f32 %v1468_v40, %v1084_v35  ;;  %1471 = vrcp.f32 %v1086_v39  ;;  %vm1093_vm6 = vweird.f32 %v1468_v40  ;;  %v1128_v52 = vand.u32 2147483648, %v1086_v39 }
 0x2e5   : > { %v1103_v46 = vmul.f32 %v1470_v44, %v1085_v36  ;;  %1473 = vtanh.f32 %v1074_v43  ;;  %vm1108_vm7 = vweird.f32 %v1470_v44  ;;  %vm1094_vm10 = vmor %vm1092_vm8, %vm1093_vm6  ;;  %vm1122_vm15 = vweird.f32 %v1086_v39 }
 0x2e6   : > { %v1089_v47 = vsub.f32 1.0, %v1088_v45  ;;  %vm1109_vm11 = vmor %vm1107_vm9, %vm1108_vm7  ;;  %v1126_v8 = vand.u32 2147483647, %v1086_v39  ;;  %v1129_v10 = vor.u32 1.1754944e-38, %v1128_v52 }
 0x2e7   : > { %v1104_v59 = vsub.f32 1.0, %v1103_v46 }
 0x2e8   : > { %v1090_v51 = vmul.f32 %v1468_v40, %v1089_v47  ;;  %vm1127_vm1 = vcmp.eq.f32.partialorder %v1126_v8, 8.507059e+37 }
 0x2e9   : > { %v1105_v41 = vmul.f32 %v1470_v44, %v1104_v59 }
 0x2ea   : > { %v1472_v3 = vpop.eup %1471  ;;  %v1091_v63 = vadd.f32 %v1468_v40, %v1090_v51 }
 0x2eb   : > { %v1118_v1 = vmul.f32 %v1472_v3, %v1086_v39  ;;  %v1106_v53 = vadd.f32 %v1470_v44, %v1105_v41  ;;  %v1474_v24 = vpop.eup %1473  ;;  %vm1123_vm14 = vweird.f32 %v1472_v3 }
 0x2ec   : > { %v1095_v2 = vsel %vm1094_vm10, %v1468_v40, %v1091_v63  ;;  %vm1124_vm0 = vmor %vm1122_vm15, %vm1123_vm14 }
 0x2ed   : > { %v1119_v49 = vsub.f32 1.0, %v1118_v1  ;;  %v1100_v58 = vsel %vm1097_vm12, %v1099_v5, %v1095_v2  ;;  %v1110_v6 = vsel %vm1109_vm11, %v1470_v44, %v1106_v53 }
 0x2ee   : > { %v1115_v61 = vsel %vm1112_vm13, %v1114_v62, %v1110_v6  ;;  %v1134_v50 = vmul.f32 %v1474_v24, %v1100_v58 }
 0x2ef   : > { %v1120_v55 = vmul.f32 %v1472_v3, %v1119_v49  ;;  %v1133_v48 = vmul.f32 %v1115_v61, %v2207_v12 }
 0x2f1   : > { %v1135_v0 = vadd.f32 %v1134_v50, %v1133_v48  ;;  %v1121_v60 = vadd.f32 %v1472_v3, %v1120_v55 }
 0x2f3   : > { %1475 = vtanh.f32 %v1135_v0  ;;  %1141 = vst [vmem:[#allocation3] sm:$0xff] %v1135_v0  ;;  %v1125_v9 = vsel %vm1124_vm0, %v1472_v3, %v1121_v60 }
 0x2f4   : > { %v1130_v13 = vsel %vm1127_vm1, %v1129_v10, %v1125_v9 }
 0x2f9   : > { %v1476_v11 = vpop.eup %1475  ;;  %1145 = sbr.rel (%p1333_p1) target bundleno = 768 (0x300), region = 48 }
 0x2fa   : > { %v1137_v14 = vmul.f32 %v1476_v11, %v1130_v13 }
 0x2fc   : > { %1332 = vst [vmem:[%s1748_s29 + $0x18] sm:$0xff] %v1137_v14 }
 0x2fd   : > { %1140 = vst [vmem:[#allocation2] sm:$0xff] %v1137_v14 }
 0x2fe   : > { %1146 = vst [vmem:[#allocation9] sm:$0xff] %v1137_v14 }
 0x2ff   : > { %1147 = vst [vmem:[#allocation11] sm:$0xff] %v1135_v0 }
 0x300 PF: > { %s1178_s18 = sshll.u32 %s2271_s5, 4  ;;  %s1639_s19 = smov [#allocation9]   ;;  %s1179_s18 = int_to_ptr.hbm [resolvable:$true] %s1178_s18 }
 0x301   : > { %s1176_s20 = sshll.u32 %s1639_s19, 4  ;;  %s1343_s26 = sshll.u32 %s1699_s25, 5  ;;  %s1177_s20 = int_to_ptr.vmem [resolvable:$true] %s1176_s20 }
 0x302   : > { %1350 = dma.vmem_to_hbm [thread:$0]  (%p129_p2), %s1177_s20, 128, %s1179_s18, [#allocation10]  }
 0x303   : > { %s1161_s28 = sshll.u32 %s1748_s29, 4  ;;  %s1160_s11 = scalar_lea.hbm %s2270_s4, %s1343_s26  ;;  %s1162_s28 = int_to_ptr.vmem [resolvable:$true] %s1161_s28 }
 0x304   : > { %s1163_s12 = sshll.u32 %s1160_s11, 4  ;;  %s1149_s13 = scalar_lea.sflag [#allocation7], %s252_s16  ;;  %s1164_s12 = int_to_ptr.hbm [resolvable:$true] %s1163_s12 }
 0x305   : > { %s1549_s14 = sshra.s32 %s1164_s12, 4  ;;  %s1555_s29 = scalar_lea.hbm %s2270_s4, 64  ;;  %s1550_s14 = int_to_ptr.hbm [resolvable:$true] %s1549_s14 }
 0x306   : > { %s1551_s15 = scalar_lea.hbm %s1550_s14, 32  ;;  %p1556_p8 = scmp.lt.s32.totalorder %s1550_s14, %s2270_s4 }
 0x307   : > { %p1552_p3 = scmp.ne.s32.totalorder %s1550_s14, %s1551_s15  ;;  %p1557_p9 = scmp.lt.s32.totalorder %s1555_s29, %s1551_s15 }
 0x309   : > { %p1553_p4 = pnand %p1552_p3, %p1718_p5  ;;  %p1558_p10 = por %p1557_p9, %p1556_p8 }
 0x30b   : > { %p1554_p7 = pneg %p1553_p4 }
 0x30d   : > { %p1559_p11 = pnand %p1558_p10, %p1554_p7 }
 0x30f   : > { %1562 = shalt.err (!%p1559_p11)
}
 0x310   : > { %s1640_s16 = smov 128   ;;  %s1641_s26 = smov 8  }
 0x311   : > { %1348 = dma.vmem_to_hbm [thread:$0]  (%p1718_p5), %s1162_s28, 512, %s1164_s12, %s1149_s13, %s1640_s16, %s1640_s16, %s1641_s26  }
 0x312   : > { %s1190_s11 = sshll.u32 %s2272_s6, 4  ;;  %s1642_s17 = smov [#allocation11]   ;;  %s1191_s11 = int_to_ptr.hbm [resolvable:$true] %s1190_s11 }
 0x313   : > { %s1188_s18 = sshll.u32 %s1642_s17, 4  ;;  %s1189_s18 = int_to_ptr.vmem [resolvable:$true] %s1188_s18 }
 0x314   : > { %1352 = dma.vmem_to_hbm [thread:$0]  (%p129_p2), %s1189_s18, 128, %s1191_s11, [#allocation10]  }
 0x315   : > { %1612 = dma.done.wait (%p129_p2), [#allocation10], 256  }
 0x316   : > { %1614 = vsyncadd (%p129_p2), [#allocation10], 4294967040 }
 0x317 PF: > { %p1372_p5 = scmp.ge.s32.totalorder %s1633_s24, 2  ;;  %s1212_s7 = sand.u32 1, %s1621_s21  }
 0x318   : > { %s1213_s28 = scalar_lea.sflag [#allocation7], %s1212_s7 }
 0x319   : > { %p1363_p12 = pnand %p1372_p5, %p1722_p6 }
 0x31b   : > { %p1364_p13 = pneg %p1363_p12 }
 0x31d   : > { %1616 = dma.done.wait (%p1364_p13), %s1213_s28, 512  }
 0x31e   : > { %1618 = vsyncadd (%p1364_p13), %s1213_s28, 4294966784  ;;  %p19_p0 = scmp.ge.s32.totalorder %s1703_s27, 4   ;;  %s2380_s21 = smov %s1625_s22 }
 0x31f   : > { %s2381_s22 = smov %s1629_s23  ;;  %s2382_s23 = smov %s1714_s30 }
 0x320   : > { %s2383_s24 = smov %s1703_s27  ;;  %21 = sbr.rel (!%p19_p0) target bundleno = 5 (0x5), region = 108 }
 0x325   :  { %1219 = vsyncpa [#allocation6], 1 }
 0x326   :  { %1221 = vsyncpa [#allocation6 + $0x1], 1 }
 0x327   :  { %1222 = vsyncpa [#allocation7], 1 }
 0x328   :  { %1224 = vsyncpa [#allocation7 + $0x1], 1 }
 0x329   :  { %1225 = vsyncpa [#allocation10], 1 }

</bundles_post_ra>
